<compile_context>
chip_gen: v7x
topology: tpu7x:2x2x1
jax: 0.10.0
libtpu: 0.0.40
codegen_flags: <defaults>
</compile_context>

<pallas_src>
import functools

import jax
import jax.numpy as jnp
from jax.experimental import pallas as pl
from jax.experimental.pallas import tpu as pltpu


# Model hyper-parameters (PyTorch __init__ defaults).
D = 8            # number of pts_linears
W = 256          # hidden width
INPUT_CH = 3
INPUT_CH_VIEWS = 3
OUTPUT_CH = 4
SKIPS = (4,)     # concat [pos, y] after layer index 4; layer 5 consumes it

POS_PAD = 8      # positions padded 3 -> 8 (sublane-friendly contraction dim)
OUT_MM = 128     # output matmul lane width (MXU does 128 lanes/pass anyway)


def _row_tile(n):
    """Largest row tile that still leaves >=2 grid steps (v7x megacore)."""
    for t in (512, 256):
        if n >= 2 * t:
            return t
    return 128


# ----------------------------------------------------------------------------
# Fused Pallas kernel: whole NeRF MLP for one tile of points.
# ----------------------------------------------------------------------------
def _nerf_mlp_kernel(pos_ref, w0_ref, b0_ref, wh_ref, bh_ref, w_skip_ref,
                     wout_ref, bout_ref, out_ref, *, skip_consumer):
    # Positions cast once to bf16 for the MXU (weights are already bf16).
    pos = pos_ref[...].astype(jnp.bfloat16)                       # (T, POS_PAD)

    # Layer 0: Linear(input_ch, W) + ReLU (bf16 MXU inputs, f32 accumulate).
    y = jnp.dot(pos, w0_ref[...], preferred_element_type=jnp.float32)
    y = jnp.maximum(y + b0_ref[...], 0.0)                         # f32 VPU

    # Layers 1 .. D-1 (statically unrolled; weights stay resident in VMEM).
    n_hidden = wh_ref.shape[0]
    for j in range(n_hidden):
        layer_idx = j + 1
        acc = jnp.dot(y.astype(jnp.bfloat16), wh_ref[j],
                      preferred_element_type=jnp.float32)
        acc = acc + bh_ref[j]
        if layer_idx == skip_consumer:
            # cat([pos, y]) @ W^T  ==  pos @ W_pos + y @ W_hidden
            acc = acc + jnp.dot(pos, w_skip_ref[...],
                                preferred_element_type=jnp.float32)
        y = jnp.maximum(acc, 0.0)

    # output_linear (no ReLU). The matmul runs at full 128-lane MXU width
    # (same MXU passes as a 4-wide result), but only the 4 real output
    # columns are stored -> 32x less HBM writeback than a 128-lane slab.
    out = jnp.dot(y.astype(jnp.bfloat16), wout_ref[...],
                  preferred_element_type=jnp.float32) + bout_ref[...]
    out_ref[...] = out[:, :out_ref.shape[1]]


def nerf_forward(kernel_params, x):
    """x: (N, input_ch + input_ch_views) f32 -> (outputs (N,4), zeros (N,3))."""
    n = x.shape[0]
    pos = x[:, :INPUT_CH]                          # input_views unused (no viewdirs)

    tile_n = _row_tile(n)
    n_pad = ((n + tile_n - 1) // tile_n) * tile_n
    pos_p = jnp.zeros((n_pad, POS_PAD), jnp.float32).at[:n, :INPUT_CH].set(pos)

    kp = kernel_params
    n_hidden = kp["wh"].shape[0]

    flops = 2 * n_pad * (2 * POS_PAD * W + n_hidden * W * W + W * OUT_MM)
    weight_bytes = sum(int(v.size) * v.dtype.itemsize for v in kp.values())
    bytes_accessed = n_pad * POS_PAD * 4 + n_pad * OUTPUT_CH * 4 + weight_bytes

    out_pad = pl.pallas_call(
        functools.partial(_nerf_mlp_kernel, skip_consumer=SKIPS[0] + 1),
        out_shape=jax.ShapeDtypeStruct((n_pad, OUTPUT_CH), jnp.float32),
        grid=(n_pad // tile_n,),
        in_specs=[
            pl.BlockSpec((tile_n, POS_PAD), lambda i: (i, 0)),
            pl.BlockSpec((POS_PAD, W), lambda i: (0, 0)),
            pl.BlockSpec((1, W), lambda i: (0, 0)),
            pl.BlockSpec((n_hidden, W, W), lambda i: (0, 0, 0)),
            pl.BlockSpec((n_hidden, 1, W), lambda i: (0, 0, 0)),
            pl.BlockSpec((POS_PAD, W), lambda i: (0, 0)),
            pl.BlockSpec((W, OUT_MM), lambda i: (0, 0)),
            pl.BlockSpec((1, OUT_MM), lambda i: (0, 0)),
        ],
        out_specs=pl.BlockSpec((tile_n, OUTPUT_CH), lambda i: (i, 0)),
        compiler_params=pltpu.CompilerParams(
            dimension_semantics=("parallel",)),
        cost_estimate=pl.CostEstimate(flops=flops, transcendentals=0,
                                      bytes_accessed=bytes_accessed),
    )(pos_p, kp["w0"], kp["b0"], kp["wh"], kp["bh"], kp["w_skip"],
      kp["wout"], kp["bout"])

    outputs = out_pad[:n]
    aux = jnp.zeros((n, 3), jnp.float32)           # zeros_like(input_positions[:, :3])
    return outputs, aux


# ----------------------------------------------------------------------------
# Parameter init (PyTorch layout) + one-time packing into kernel layout.
# ----------------------------------------------------------------------------
def _dense(key, out_f, in_f):
    kw, kb = jax.random.split(key)
    s = 1.0 / (in_f ** 0.5)
    w = s * jax.random.normal(kw, (out_f, in_f), jnp.float32)   # torch (out, in)
    b = s * jax.random.normal(kb, (out_f,), jnp.float32)
    return w, b


def init_raw_params(key):
    """Weights in PyTorch (out_features, in_features) convention."""
    keys = jax.random.split(key, D + 1)
    pts = [_dense(keys[0], W, INPUT_CH)]
    for i in range(D - 1):
        in_ch = W + (INPUT_CH if i in SKIPS else 0)
        pts.append(_dense(keys[1 + i], W, in_ch))
    out_w, out_b = _dense(keys[D], OUTPUT_CH, W)
    return dict(pts=pts, out_w=out_w, out_b=out_b)


def pack_params(raw):
    """Pre-transpose / pre-pad / bf16-cast once so the hot path does no layout work."""
    w0_t, b0 = raw["pts"][0]
    w0 = jnp.zeros((POS_PAD, W), jnp.float32).at[:INPUT_CH, :].set(w0_t.T)
    b0 = b0.reshape(1, W)

    wh, bh = [], []
    w_skip = jnp.zeros((POS_PAD, W), jnp.float32)
    skip_consumer = SKIPS[0] + 1
    for i in range(1, D):
        w_t, b = raw["pts"][i]
        if i == skip_consumer:
            # torch cat([pos, y]) -> first INPUT_CH input columns are positions.
            w_skip = w_skip.at[:INPUT_CH, :].set(w_t[:, :INPUT_CH].T)
            wh.append(w_t[:, INPUT_CH:].T)
        else:
            wh.append(w_t.T)
        bh.append(b.reshape(1, W))
    wh = jnp.stack(wh)                       # (D-1, W, W)
    bh = jnp.stack(bh)                       # (D-1, 1, W)

    wout = jnp.zeros((W, OUT_MM), jnp.float32).at[:, :OUTPUT_CH].set(raw["out_w"].T)
    bout = jnp.zeros((1, OUT_MM), jnp.float32).at[0, :OUTPUT_CH].set(raw["out_b"])

    # Matmul weights in bf16 (MXU peak + half the VMEM), biases stay f32.
    return dict(w0=w0.astype(jnp.bfloat16), b0=b0,
                wh=wh.astype(jnp.bfloat16), bh=bh,
                w_skip=w_skip.astype(jnp.bfloat16),
                wout=wout.astype(jnp.bfloat16), bout=bout)


# ----------------------------------------------------------------------------
# Pure-JAX references for correctness checking.
# ----------------------------------------------------------------------------
def nerf_reference(raw, x):
    """Exact f32 mirror of the PyTorch forward."""
    pos = x[:, :INPUT_CH]
    y = pos
    for i, (w, b) in enumerate(raw["pts"]):
        y = jnp.maximum(y @ w.T + b, 0.0)
        if i in SKIPS:
            y = jnp.concatenate([pos, y], axis=-1)
    out = y @ raw["out_w"].T + raw["out_b"]
    return out, jnp.zeros_like(pos[:, :3])


def nerf_reference_bf16(raw, x):
    """Same math with bf16 matmul inputs / f32 accumulation (kernel numerics)."""
    pos = x[:, :INPUT_CH]
    y = pos
    for i, (w, b) in enumerate(raw["pts"]):
        y = jnp.dot(y.astype(jnp.bfloat16), w.T.astype(jnp.bfloat16),
                    preferred_element_type=jnp.float32) + b
        y = jnp.maximum(y, 0.0)
        if i in SKIPS:
            y = jnp.concatenate([pos, y], axis=-1)
    out = jnp.dot(y.astype(jnp.bfloat16), raw["out_w"].T.astype(jnp.bfloat16),
                  preferred_element_type=jnp.float32) + raw["out_b"]
    return out, jnp.zeros_like(pos[:, :3])


def _check(out, aux, raw, x, batch):
    ref_bf16, _ = nerf_reference_bf16(raw, x)
    ref_f32, _ = nerf_reference(raw, x)
    assert out.shape == (batch, OUTPUT_CH), out.shape
    assert aux.shape == (batch, 3), aux.shape
    assert bool(jnp.all(jnp.isfinite(out)))
    assert bool(jnp.all(aux == 0.0))
    # Tight vs. bf16/f32-accumulate reference (same numerics as the kernel).
    assert bool(jnp.allclose(out, ref_bf16, rtol=1e-2, atol=1e-2)), (
        float(jnp.max(jnp.abs(out - ref_bf16))))
    # Loose vs. the pure-f32 PyTorch-equivalent reference (bf16 rounding).
    assert bool(jnp.allclose(out, ref_f32, rtol=1e-1, atol=1e-1)), (
        float(jnp.max(jnp.abs(out - ref_f32))))


if __name__ == "__main__":
    key = jax.random.PRNGKey(0)
    kp_key, kx1, kx2 = jax.random.split(key, 3)

    raw = init_raw_params(kp_key)
    kernel_params = pack_params(raw)

    fwd = jax.jit(nerf_forward)

    # Small batch (single grid step, tile 128).
    batch = 64
    x = jax.random.normal(kx1, (batch, INPUT_CH + INPUT_CH_VIEWS), jnp.float32)
    out, aux = fwd(kernel_params, x)
    jax.block_until_ready((out, aux))
    _check(out, aux, raw, x, batch)

    # Larger batch exercising the 512-row tile, multi-step grid and row padding.
    batch2 = 1300
    x2 = jax.random.normal(kx2, (batch2, INPUT_CH + INPUT_CH_VIEWS), jnp.float32)
    out2, aux2 = fwd(kernel_params, x2)
    jax.block_until_ready((out2, aux2))
    _check(out2, aux2, raw, x2, batch2)

    print("KERNEL_OK")
</pallas_src>

<mosaic_0001>
module attributes {stable_mosaic.version = 11 : i64} {
  func.func @_nerf_mlp_kernel(%arg0: i32, %arg1: memref<128x8xf32, #tpu.memory_space<vmem>>, %arg2: memref<8x256xbf16, #tpu.memory_space<vmem>>, %arg3: memref<1x256xf32, #tpu.memory_space<vmem>>, %arg4: memref<7x256x256xbf16, #tpu.memory_space<vmem>>, %arg5: memref<7x1x256xf32, #tpu.memory_space<vmem>>, %arg6: memref<8x256xbf16, #tpu.memory_space<vmem>>, %arg7: memref<256x128xbf16, #tpu.memory_space<vmem>>, %arg8: memref<1x128xf32, #tpu.memory_space<vmem>>, %arg9: memref<128x4xf32, #tpu.memory_space<vmem>>) attributes {dimension_semantics = [#tpu.dimension_semantics<parallel>], iteration_bounds = array<i64: 1>, scalar_prefetch = 0 : i64, scratch_operands = 0 : i64, tpu.core_type = #tpu.core_type<tc>, window_params = [{transform_indices = @transform_0, window_bounds = array<i64: 128, 8>}, {pipeline_mode = #tpu.pipeline_mode<synchronous>, transform_indices = @transform_1, window_bounds = array<i64: 8, 256>}, {pipeline_mode = #tpu.pipeline_mode<synchronous>, transform_indices = @transform_2, window_bounds = array<i64: 1, 256>}, {pipeline_mode = #tpu.pipeline_mode<synchronous>, transform_indices = @transform_3, window_bounds = array<i64: 7, 256, 256>}, {pipeline_mode = #tpu.pipeline_mode<synchronous>, transform_indices = @transform_4, window_bounds = array<i64: 7, 1, 256>}, {pipeline_mode = #tpu.pipeline_mode<synchronous>, transform_indices = @transform_5, window_bounds = array<i64: 8, 256>}, {pipeline_mode = #tpu.pipeline_mode<synchronous>, transform_indices = @transform_6, window_bounds = array<i64: 256, 128>}, {pipeline_mode = #tpu.pipeline_mode<synchronous>, transform_indices = @transform_7, window_bounds = array<i64: 1, 128>}, {transform_indices = @transform_8, window_bounds = array<i64: 128, 4>}]} {
    %c0 = arith.constant 0 : index
    %c0_0 = arith.constant 0 : index
    %0 = vector.load %arg1[%c0, %c0_0] : memref<128x8xf32, #tpu.memory_space<vmem>>, vector<128x8xf32>
    %1 = arith.truncf %0 : vector<128x8xf32> to vector<128x8xbf16>
    %c0_1 = arith.constant 0 : index
    %c0_2 = arith.constant 0 : index
    %2 = vector.load %arg2[%c0_1, %c0_2] : memref<8x256xbf16, #tpu.memory_space<vmem>>, vector<8x256xbf16>
    %cst = arith.constant dense<0.000000e+00> : vector<128x256xf32>
    %3 = tpu.matmul %1, %2, %cst {dimension_numbers = #tpu.dot_dimension_numbers<[1], [0], [0], [1], [0, 0, 1, 1], [], []>} : vector<128x8xbf16>, vector<8x256xbf16>, vector<128x256xf32> -> vector<128x256xf32>
    %c0_3 = arith.constant 0 : index
    %c0_4 = arith.constant 0 : index
    %4 = vector.load %arg3[%c0_3, %c0_4] : memref<1x256xf32, #tpu.memory_space<vmem>>, vector<1x256xf32>
    %5 = vector.broadcast %4 : vector<1x256xf32> to vector<128x256xf32>
    %6 = arith.addf %3, %5 : vector<128x256xf32>
    %cst_5 = arith.constant 0.000000e+00 : f32
    %7 = vector.broadcast %cst_5 : f32 to vector<128x256xf32>
    %8 = arith.maximumf %6, %7 : vector<128x256xf32>
    %9 = arith.truncf %8 : vector<128x256xf32> to vector<128x256xbf16>
    %c0_6 = arith.constant 0 : index
    %c0_7 = arith.constant 0 : index
    %c0_8 = arith.constant 0 : index
    %10 = vector.load %arg4[%c0_6, %c0_7, %c0_8] : memref<7x256x256xbf16, #tpu.memory_space<vmem>>, vector<1x256x256xbf16>
    %11 = vector.shape_cast %10 : vector<1x256x256xbf16> to vector<256x256xbf16>
    %cst_9 = arith.constant dense<0.000000e+00> : vector<128x256xf32>
    %12 = tpu.matmul %9, %11, %cst_9 {dimension_numbers = #tpu.dot_dimension_numbers<[1], [0], [0], [1], [0, 0, 1, 1], [], []>} : vector<128x256xbf16>, vector<256x256xbf16>, vector<128x256xf32> -> vector<128x256xf32>
    %c0_10 = arith.constant 0 : index
    %c0_11 = arith.constant 0 : index
    %c0_12 = arith.constant 0 : index
    %13 = vector.load %arg5[%c0_10, %c0_11, %c0_12] : memref<7x1x256xf32, #tpu.memory_space<vmem>>, vector<1x1x256xf32>
    %14 = vector.shape_cast %13 : vector<1x1x256xf32> to vector<1x256xf32>
    %15 = vector.broadcast %14 : vector<1x256xf32> to vector<128x256xf32>
    %16 = arith.addf %12, %15 : vector<128x256xf32>
    %cst_13 = arith.constant 0.000000e+00 : f32
    %17 = vector.broadcast %cst_13 : f32 to vector<128x256xf32>
    %18 = arith.maximumf %16, %17 : vector<128x256xf32>
    %19 = arith.truncf %18 : vector<128x256xf32> to vector<128x256xbf16>
    %c1 = arith.constant 1 : index
    %c0_14 = arith.constant 0 : index
    %c0_15 = arith.constant 0 : index
    %20 = vector.load %arg4[%c1, %c0_14, %c0_15] : memref<7x256x256xbf16, #tpu.memory_space<vmem>>, vector<1x256x256xbf16>
    %21 = vector.shape_cast %20 : vector<1x256x256xbf16> to vector<256x256xbf16>
    %cst_16 = arith.constant dense<0.000000e+00> : vector<128x256xf32>
    %22 = tpu.matmul %19, %21, %cst_16 {dimension_numbers = #tpu.dot_dimension_numbers<[1], [0], [0], [1], [0, 0, 1, 1], [], []>} : vector<128x256xbf16>, vector<256x256xbf16>, vector<128x256xf32> -> vector<128x256xf32>
    %c1_17 = arith.constant 1 : index
    %c0_18 = arith.constant 0 : index
    %c0_19 = arith.constant 0 : index
    %23 = vector.load %arg5[%c1_17, %c0_18, %c0_19] : memref<7x1x256xf32, #tpu.memory_space<vmem>>, vector<1x1x256xf32>
    %24 = vector.shape_cast %23 : vector<1x1x256xf32> to vector<1x256xf32>
    %25 = vector.broadcast %24 : vector<1x256xf32> to vector<128x256xf32>
    %26 = arith.addf %22, %25 : vector<128x256xf32>
    %cst_20 = arith.constant 0.000000e+00 : f32
    %27 = vector.broadcast %cst_20 : f32 to vector<128x256xf32>
    %28 = arith.maximumf %26, %27 : vector<128x256xf32>
    %29 = arith.truncf %28 : vector<128x256xf32> to vector<128x256xbf16>
    %c2 = arith.constant 2 : index
    %c0_21 = arith.constant 0 : index
    %c0_22 = arith.constant 0 : index
    %30 = vector.load %arg4[%c2, %c0_21, %c0_22] : memref<7x256x256xbf16, #tpu.memory_space<vmem>>, vector<1x256x256xbf16>
    %31 = vector.shape_cast %30 : vector<1x256x256xbf16> to vector<256x256xbf16>
    %cst_23 = arith.constant dense<0.000000e+00> : vector<128x256xf32>
    %32 = tpu.matmul %29, %31, %cst_23 {dimension_numbers = #tpu.dot_dimension_numbers<[1], [0], [0], [1], [0, 0, 1, 1], [], []>} : vector<128x256xbf16>, vector<256x256xbf16>, vector<128x256xf32> -> vector<128x256xf32>
    %c2_24 = arith.constant 2 : index
    %c0_25 = arith.constant 0 : index
    %c0_26 = arith.constant 0 : index
    %33 = vector.load %arg5[%c2_24, %c0_25, %c0_26] : memref<7x1x256xf32, #tpu.memory_space<vmem>>, vector<1x1x256xf32>
    %34 = vector.shape_cast %33 : vector<1x1x256xf32> to vector<1x256xf32>
    %35 = vector.broadcast %34 : vector<1x256xf32> to vector<128x256xf32>
    %36 = arith.addf %32, %35 : vector<128x256xf32>
    %cst_27 = arith.constant 0.000000e+00 : f32
    %37 = vector.broadcast %cst_27 : f32 to vector<128x256xf32>
    %38 = arith.maximumf %36, %37 : vector<128x256xf32>
    %39 = arith.truncf %38 : vector<128x256xf32> to vector<128x256xbf16>
    %c3 = arith.constant 3 : index
    %c0_28 = arith.constant 0 : index
    %c0_29 = arith.constant 0 : index
    %40 = vector.load %arg4[%c3, %c0_28, %c0_29] : memref<7x256x256xbf16, #tpu.memory_space<vmem>>, vector<1x256x256xbf16>
    %41 = vector.shape_cast %40 : vector<1x256x256xbf16> to vector<256x256xbf16>
    %cst_30 = arith.constant dense<0.000000e+00> : vector<128x256xf32>
    %42 = tpu.matmul %39, %41, %cst_30 {dimension_numbers = #tpu.dot_dimension_numbers<[1], [0], [0], [1], [0, 0, 1, 1], [], []>} : vector<128x256xbf16>, vector<256x256xbf16>, vector<128x256xf32> -> vector<128x256xf32>
    %c3_31 = arith.constant 3 : index
    %c0_32 = arith.constant 0 : index
    %c0_33 = arith.constant 0 : index
    %43 = vector.load %arg5[%c3_31, %c0_32, %c0_33] : memref<7x1x256xf32, #tpu.memory_space<vmem>>, vector<1x1x256xf32>
    %44 = vector.shape_cast %43 : vector<1x1x256xf32> to vector<1x256xf32>
    %45 = vector.broadcast %44 : vector<1x256xf32> to vector<128x256xf32>
    %46 = arith.addf %42, %45 : vector<128x256xf32>
    %cst_34 = arith.constant 0.000000e+00 : f32
    %47 = vector.broadcast %cst_34 : f32 to vector<128x256xf32>
    %48 = arith.maximumf %46, %47 : vector<128x256xf32>
    %49 = arith.truncf %48 : vector<128x256xf32> to vector<128x256xbf16>
    %c4 = arith.constant 4 : index
    %c0_35 = arith.constant 0 : index
    %c0_36 = arith.constant 0 : index
    %50 = vector.load %arg4[%c4, %c0_35, %c0_36] : memref<7x256x256xbf16, #tpu.memory_space<vmem>>, vector<1x256x256xbf16>
    %51 = vector.shape_cast %50 : vector<1x256x256xbf16> to vector<256x256xbf16>
    %cst_37 = arith.constant dense<0.000000e+00> : vector<128x256xf32>
    %52 = tpu.matmul %49, %51, %cst_37 {dimension_numbers = #tpu.dot_dimension_numbers<[1], [0], [0], [1], [0, 0, 1, 1], [], []>} : vector<128x256xbf16>, vector<256x256xbf16>, vector<128x256xf32> -> vector<128x256xf32>
    %c4_38 = arith.constant 4 : index
    %c0_39 = arith.constant 0 : index
    %c0_40 = arith.constant 0 : index
    %53 = vector.load %arg5[%c4_38, %c0_39, %c0_40] : memref<7x1x256xf32, #tpu.memory_space<vmem>>, vector<1x1x256xf32>
    %54 = vector.shape_cast %53 : vector<1x1x256xf32> to vector<1x256xf32>
    %55 = vector.broadcast %54 : vector<1x256xf32> to vector<128x256xf32>
    %56 = arith.addf %52, %55 : vector<128x256xf32>
    %c0_41 = arith.constant 0 : index
    %c0_42 = arith.constant 0 : index
    %57 = vector.load %arg6[%c0_41, %c0_42] : memref<8x256xbf16, #tpu.memory_space<vmem>>, vector<8x256xbf16>
    %cst_43 = arith.constant dense<0.000000e+00> : vector<128x256xf32>
    %58 = tpu.matmul %1, %57, %cst_43 {dimension_numbers = #tpu.dot_dimension_numbers<[1], [0], [0], [1], [0, 0, 1, 1], [], []>} : vector<128x8xbf16>, vector<8x256xbf16>, vector<128x256xf32> -> vector<128x256xf32>
    %59 = arith.addf %56, %58 : vector<128x256xf32>
    %cst_44 = arith.constant 0.000000e+00 : f32
    %60 = vector.broadcast %cst_44 : f32 to vector<128x256xf32>
    %61 = arith.maximumf %59, %60 : vector<128x256xf32>
    %62 = arith.truncf %61 : vector<128x256xf32> to vector<128x256xbf16>
    %c5 = arith.constant 5 : index
    %c0_45 = arith.constant 0 : index
    %c0_46 = arith.constant 0 : index
    %63 = vector.load %arg4[%c5, %c0_45, %c0_46] : memref<7x256x256xbf16, #tpu.memory_space<vmem>>, vector<1x256x256xbf16>
    %64 = vector.shape_cast %63 : vector<1x256x256xbf16> to vector<256x256xbf16>
    %cst_47 = arith.constant dense<0.000000e+00> : vector<128x256xf32>
    %65 = tpu.matmul %62, %64, %cst_47 {dimension_numbers = #tpu.dot_dimension_numbers<[1], [0], [0], [1], [0, 0, 1, 1], [], []>} : vector<128x256xbf16>, vector<256x256xbf16>, vector<128x256xf32> -> vector<128x256xf32>
    %c5_48 = arith.constant 5 : index
    %c0_49 = arith.constant 0 : index
    %c0_50 = arith.constant 0 : index
    %66 = vector.load %arg5[%c5_48, %c0_49, %c0_50] : memref<7x1x256xf32, #tpu.memory_space<vmem>>, vector<1x1x256xf32>
    %67 = vector.shape_cast %66 : vector<1x1x256xf32> to vector<1x256xf32>
    %68 = vector.broadcast %67 : vector<1x256xf32> to vector<128x256xf32>
    %69 = arith.addf %65, %68 : vector<128x256xf32>
    %cst_51 = arith.constant 0.000000e+00 : f32
    %70 = vector.broadcast %cst_51 : f32 to vector<128x256xf32>
    %71 = arith.maximumf %69, %70 : vector<128x256xf32>
    %72 = arith.truncf %71 : vector<128x256xf32> to vector<128x256xbf16>
    %c6 = arith.constant 6 : index
    %c0_52 = arith.constant 0 : index
    %c0_53 = arith.constant 0 : index
    %73 = vector.load %arg4[%c6, %c0_52, %c0_53] : memref<7x256x256xbf16, #tpu.memory_space<vmem>>, vector<1x256x256xbf16>
    %74 = vector.shape_cast %73 : vector<1x256x256xbf16> to vector<256x256xbf16>
    %cst_54 = arith.constant dense<0.000000e+00> : vector<128x256xf32>
    %75 = tpu.matmul %72, %74, %cst_54 {dimension_numbers = #tpu.dot_dimension_numbers<[1], [0], [0], [1], [0, 0, 1, 1], [], []>} : vector<128x256xbf16>, vector<256x256xbf16>, vector<128x256xf32> -> vector<128x256xf32>
    %c6_55 = arith.constant 6 : index
    %c0_56 = arith.constant 0 : index
    %c0_57 = arith.constant 0 : index
    %76 = vector.load %arg5[%c6_55, %c0_56, %c0_57] : memref<7x1x256xf32, #tpu.memory_space<vmem>>, vector<1x1x256xf32>
    %77 = vector.shape_cast %76 : vector<1x1x256xf32> to vector<1x256xf32>
    %78 = vector.broadcast %77 : vector<1x256xf32> to vector<128x256xf32>
    %79 = arith.addf %75, %78 : vector<128x256xf32>
    %cst_58 = arith.constant 0.000000e+00 : f32
    %80 = vector.broadcast %cst_58 : f32 to vector<128x256xf32>
    %81 = arith.maximumf %79, %80 : vector<128x256xf32>
    %82 = arith.truncf %81 : vector<128x256xf32> to vector<128x256xbf16>
    %c0_59 = arith.constant 0 : index
    %c0_60 = arith.constant 0 : index
    %83 = vector.load %arg7[%c0_59, %c0_60] : memref<256x128xbf16, #tpu.memory_space<vmem>>, vector<256x128xbf16>
    %cst_61 = arith.constant dense<0.000000e+00> : vector<128x128xf32>
    %84 = tpu.matmul %82, %83, %cst_61 {dimension_numbers = #tpu.dot_dimension_numbers<[1], [0], [0], [1], [0, 0, 1, 1], [], []>} : vector<128x256xbf16>, vector<256x128xbf16>, vector<128x128xf32> -> vector<128x128xf32>
    %c0_62 = arith.constant 0 : index
    %c0_63 = arith.constant 0 : index
    %85 = vector.load %arg8[%c0_62, %c0_63] : memref<1x128xf32, #tpu.memory_space<vmem>>, vector<1x128xf32>
    %86 = vector.broadcast %85 : vector<1x128xf32> to vector<128x128xf32>
    %87 = arith.addf %84, %86 : vector<128x128xf32>
    %88 = vector.extract_strided_slice %87 {offsets = [0, 0], sizes = [128, 4], strides = [1, 1]} : vector<128x128xf32> to vector<128x4xf32>
    %c0_64 = arith.constant 0 : index
    %c0_65 = arith.constant 0 : index
    %89 = vector.load %arg9[%c0_64, %c0_65] : memref<128x4xf32, #tpu.memory_space<vmem>>, vector<128x4xf32>
    tpu.vector_store %arg9[%c0_64, %c0_65], %88 {strides = array<i32>} : memref<128x4xf32, #tpu.memory_space<vmem>>, vector<128x4xf32>,
    return
  }
  func.func @transform_0(%arg0: i32) -> (i32, i32) {
    %c0_i32 = arith.constant 0 : i32
    %c0_i32_0 = arith.constant 0 : i32
    return %arg0, %c0_i32 : i32, i32
  }
  func.func @transform_1(%arg0: i32) -> (i32, i32) {
    %c0_i32 = arith.constant 0 : i32
    %c0_i32_0 = arith.constant 0 : i32
    %c0_i32_1 = arith.constant 0 : i32
    return %c0_i32, %c0_i32_0 : i32, i32
  }
  func.func @transform_2(%arg0: i32) -> (i32, i32) {
    %c0_i32 = arith.constant 0 : i32
    %c0_i32_0 = arith.constant 0 : i32
    %c0_i32_1 = arith.constant 0 : i32
    return %c0_i32, %c0_i32_0 : i32, i32
  }
  func.func @transform_3(%arg0: i32) -> (i32, i32, i32) {
    %c0_i32 = arith.constant 0 : i32
    %c0_i32_0 = arith.constant 0 : i32
    %c0_i32_1 = arith.constant 0 : i32
    %c0_i32_2 = arith.constant 0 : i32
    return %c0_i32, %c0_i32_0, %c0_i32_1 : i32, i32, i32
  }
  func.func @transform_4(%arg0: i32) -> (i32, i32, i32) {
    %c0_i32 = arith.constant 0 : i32
    %c0_i32_0 = arith.constant 0 : i32
    %c0_i32_1 = arith.constant 0 : i32
    %c0_i32_2 = arith.constant 0 : i32
    return %c0_i32, %c0_i32_0, %c0_i32_1 : i32, i32, i32
  }
  func.func @transform_5(%arg0: i32) -> (i32, i32) {
    %c0_i32 = arith.constant 0 : i32
    %c0_i32_0 = arith.constant 0 : i32
    %c0_i32_1 = arith.constant 0 : i32
    return %c0_i32, %c0_i32_0 : i32, i32
  }
  func.func @transform_6(%arg0: i32) -> (i32, i32) {
    %c0_i32 = arith.constant 0 : i32
    %c0_i32_0 = arith.constant 0 : i32
    %c0_i32_1 = arith.constant 0 : i32
    return %c0_i32, %c0_i32_0 : i32, i32
  }
  func.func @transform_7(%arg0: i32) -> (i32, i32) {
    %c0_i32 = arith.constant 0 : i32
    %c0_i32_0 = arith.constant 0 : i32
    %c0_i32_1 = arith.constant 0 : i32
    return %c0_i32, %c0_i32_0 : i32, i32
  }
  func.func @transform_8(%arg0: i32) -> (i32, i32) {
    %c0_i32 = arith.constant 0 : i32
    %c0_i32_0 = arith.constant 0 : i32
    return %arg0, %c0_i32 : i32, i32
  }
}

</mosaic_0001>

<bundles_post_ra>
// kernel: nerf_forward.1
= control target key start
LH: loop header
LB: loop body
LE: loop exit
PB: predicated region body
PF: predicated region fallthrough
CT: control target
= control target key end

     0   :  { %13 = vsyncpa [#allocation3], 0  ;;  %s4054_s27 = smov [#allocation2]   ;;  %s4718_s0 = inlined_call_operand.vmem [shape: f32[128,8], index: 0, kind: input, shape index: {}]   ;;  %s4719_s1 = inlined_call_operand.vmem [shape: bf16[8,256], index: 1, kind: input, shape index: {}]   ;;  %s4720_s2 = inlined_call_operand.vmem [shape: f32[1,256], index: 2, kind: input, shape index: {}]   ;;  %s4721_s3 = inlined_call_operand.hbm [shape: bf16[7,256,256], index: 3, kind: input, shape index: {}]   ;;  %s4722_s4 = inlined_call_operand.vmem [shape: f32[7,1,256], index: 4, kind: input, shape index: {}]   ;;  %s4723_s5 = inlined_call_operand.vmem [shape: bf16[8,256], index: 5, kind: input, shape index: {}]   ;;  %s4724_s6 = inlined_call_operand.vmem [shape: bf16[256,128], index: 6, kind: input, shape index: {}]   ;;  %s4725_s7 = inlined_call_operand.vmem [shape: f32[1,128], index: 7, kind: input, shape index: {}]   ;;  %s4726_s8 = inlined_call_operand.vmem [shape: f32[128,4], index: 8, kind: output, shape index: {}]  }
   0x1   :  { %s25_s28 = sshll.u32 %s4054_s27, 4  ;;  %s4030_s9 = scalar_lea.hbm %s4721_s3, 28672  ;;  %s26_s28 = int_to_ptr.vmem [resolvable:$true] %s25_s28 }
   0x2   :  { %p4031_p0 = scmp.ne.s32.totalorder %s4721_s3, %s4030_s9  ;;  %p4034_p1 = scmp.lt.u32.totalorder %s4030_s9, %s4721_s3 }
   0x4   :  { %p4036_p2 = pnand %p4034_p1, %p4031_p0 }
   0x6   :  { %4039 = shalt.err (!%p4036_p2)
}
   0x7   :  { %s4040_s14 = scalar_lea.vmem %s26_s28, 28672  ;;  %p4045_p4 = scmp.lt.s32.totalorder %s26_s28, %s26_s28 }
   0x8   :  { %p4041_p3 = scmp.ne.s32.totalorder %s26_s28, %s4040_s14  ;;  %p4046_p5 = scmp.lt.s32.totalorder %s4040_s14, %s4040_s14 }
   0xa   :  { %p4047_p6 = por %p4046_p5, %p4045_p4 }
   0xc   :  { %p4048_p7 = pnand %p4047_p6, %p4041_p3 }
   0xe   :  { %4051 = shalt.err (!%p4048_p7)
}
   0xf   :  { %s4055_s15 = smov 128   ;;  %s4056_s16 = smov 8  }
  0x10   :  { %31 = dma.hbm_to_vmem [thread:$0]  %s4721_s3, 28672, %s26_s28, [#allocation3], %s4055_s15, %s4055_s15, %s4056_s16  }
  0x11   :  { %4052 = dma.done.wait [#allocation3], 28672  }
  0x12   :  { %4053 = vsyncadd [#allocation3], 4294938624  ;;  %v4057_v0 = vmov 0   ;;  %v68_v1 = vld [vmem:[%s4719_s1] sm:$0xff]  ;;  %vm111_vm0 = vcmask 1043456   ;;  %v45_v3 = vld [vmem:[%s4718_s0 + $0x8] sm:$0xff] }
  0x13   :  { %150 = vmatprep.mubr.bf16.mxu0 %v4057_v0  ;;  %v44_v2 = vld [vmem:[%s4718_s0] sm:$0xff]  ;;  %v3258_v4 = vcombine.high %v68_v1, %v68_v1  ;;  %v3257_v5 = vcombine.low %v68_v1, %v68_v1  ;;  %vm86_vm1 = vcmask 64512   ;;  %v46_v8 = vld [vmem:[%s4718_s0 + $0x10] sm:$0xff]  ;;  %v47_v12 = vld [vmem:[%s4718_s0 + $0x18] sm:$0xff]  ;;  %vm3235_vm2 = vcmask 31744  }
  0x14   :  { %v4127_v7 = vpack.c.bf16 %v45_v3, %v44_v2  ;;  %v3676_v9 = vld [vmem:[#allocation2 + $0x4] ss:$8 sps:$4 sm:$0xff]   ;;  %v3678_v10 = vld [vmem:[#allocation2] ss:$8 sps:$4 sm:$0xff]   ;;  %v3679_v11 = vld [vmem:[#allocation2 + $0x14] ss:$8 sps:$4 sm:$0xff]   ;;  %v4138_v15 = vpack.c.bf16 %v47_v12, %v46_v8 }
  0x15   :  { %3259 = vmatprep.subr.msk.bf16.mxu0 %vm111_vm0, %v3258_v4  ;;  %v113_v6 = vsel %vm111_vm0, %v3257_v5, 0  ;;  %483 = vmatprep.subr.bf16.mxu1 %v3676_v9  ;;  %v3681_v13 = vld [vmem:[#allocation2 + $0x10] ss:$8 sps:$4 sm:$0xff]   ;;  %v3682_v14 = vld [vmem:[#allocation2 + $0x24] ss:$8 sps:$4 sm:$0xff]  }
  0x16   :  { %119 = vmatpush1.bf16.msra.mxu0 %v113_v6  ;;  %484 = vmatpush1.bf16.msra.mxu1 %v3678_v10  ;;  %v3684_v16 = vld [vmem:[#allocation2 + $0x20] ss:$8 sps:$4 sm:$0xff]   ;;  %v3685_v17 = vld [vmem:[#allocation2 + $0x34] ss:$8 sps:$4 sm:$0xff]   ;;  %v3687_v20 = vld [vmem:[#allocation2 + $0x30] ss:$8 sps:$4 sm:$0xff]  }
  0x17   :  { %485 = vmatprep.subr.bf16.mxu1 %v3679_v11  ;;  %v48_v18 = vld [vmem:[%s4718_s0 + $0x20] sm:$0xff]  ;;  %v49_v19 = vld [vmem:[%s4718_s0 + $0x28] sm:$0xff]  ;;  %v50_v24 = vld [vmem:[%s4718_s0 + $0x30] sm:$0xff] }
  0x18   :  { %v3688_v21 = vld [vmem:[#allocation2 + $0x44] ss:$8 sps:$4 sm:$0xff]   ;;  %v4149_v22 = vpack.c.bf16 %v49_v19, %v48_v18  ;;  %v3690_v23 = vld [vmem:[#allocation2 + $0x40] ss:$8 sps:$4 sm:$0xff]   ;;  %v51_v25 = vld [vmem:[%s4718_s0 + $0x38] sm:$0xff] }
  0x19   :  { %3260 = vmatmul.mubr.msk.bf16.vlgmr.msra.gmra.mrb[0].mxu0 %vm86_vm1, %v4127_v7  ;;  %v3691_v26 = vld [vmem:[#allocation2 + $0x54] ss:$8 sps:$4 sm:$0xff]   ;;  %v3693_v27 = vld [vmem:[#allocation2 + $0x50] ss:$8 sps:$4 sm:$0xff]   ;;  %v3694_v28 = vld [vmem:[#allocation2 + $0x64] ss:$8 sps:$4 sm:$0xff]   ;;  %v4160_v29 = vpack.c.bf16 %v51_v25, %v50_v24 }
  0x1a   :  { %160 = vmatprep.mubr.bf16.mxu0 %v4057_v0  ;;  %486 = vmatpush1.bf16.msra.mxu1 %v3681_v13  ;;  %v3696_v30 = vld [vmem:[#allocation2 + $0x60] ss:$8 sps:$4 sm:$0xff]   ;;  %v3697_v31 = vld [vmem:[#allocation2 + $0x74] ss:$8 sps:$4 sm:$0xff]   ;;  %v3699_v34 = vld [vmem:[#allocation2 + $0x70] ss:$8 sps:$4 sm:$0xff]  }
  0x1b   :  { %487 = vmatprep.subr.bf16.mxu1 %v3682_v14  ;;  %v52_v32 = vld [vmem:[%s4718_s0 + $0x40] sm:$0xff]  ;;  %v53_v33 = vld [vmem:[%s4718_s0 + $0x48] sm:$0xff]  ;;  %v3703_v38 = vld [vmem:[#allocation2 + $0x94] ss:$8 sps:$4 sm:$0xff]  }
  0x1c   :  { %v3700_v35 = vld [vmem:[#allocation2 + $0x84] ss:$8 sps:$4 sm:$0xff]   ;;  %v4171_v36 = vpack.c.bf16 %v53_v33, %v52_v32  ;;  %v3702_v37 = vld [vmem:[#allocation2 + $0x80] ss:$8 sps:$4 sm:$0xff]   ;;  %v54_v39 = vld [vmem:[%s4718_s0 + $0x50] sm:$0xff] }
  0x1d   :  { %v55_v40 = vld [vmem:[%s4718_s0 + $0x58] sm:$0xff]  ;;  %v3706_v42 = vld [vmem:[#allocation2 + $0xa4] ss:$8 sps:$4 sm:$0xff]   ;;  %v3708_v44 = vld [vmem:[#allocation2 + $0xa0] ss:$8 sps:$4 sm:$0xff]  }
  0x1e   :  { %488 = vmatpush1.bf16.msra.mxu1 %v3684_v16  ;;  %v3705_v41 = vld [vmem:[#allocation2 + $0x90] ss:$8 sps:$4 sm:$0xff]   ;;  %v4182_v43 = vpack.c.bf16 %v55_v40, %v54_v39  ;;  %v3709_v45 = vld [vmem:[#allocation2 + $0xb4] ss:$8 sps:$4 sm:$0xff]   ;;  %v56_v46 = vld [vmem:[%s4718_s0 + $0x60] sm:$0xff] }
  0x1f   :  { %489 = vmatprep.subr.bf16.mxu1 %v3685_v17  ;;  %v57_v47 = vld [vmem:[%s4718_s0 + $0x68] sm:$0xff]  ;;  %v3711_v48 = vld [vmem:[#allocation2 + $0xb0] ss:$8 sps:$4 sm:$0xff]   ;;  %v3715_v52 = vld [vmem:[#allocation2 + $0xd4] ss:$8 sps:$4 sm:$0xff]  }
  0x20   :  { %v3712_v49 = vld [vmem:[#allocation2 + $0xc4] ss:$8 sps:$4 sm:$0xff]   ;;  %v4193_v50 = vpack.c.bf16 %v57_v47, %v56_v46  ;;  %v3714_v51 = vld [vmem:[#allocation2 + $0xc0] ss:$8 sps:$4 sm:$0xff]   ;;  %v58_v53 = vld [vmem:[%s4718_s0 + $0x70] sm:$0xff] }
  0x21   :  { %3261 = vmatmul.mubr.msk.bf16.gmra.mrb[4].mxu0 %vm86_vm1, %v4138_v15  ;;  %v59_v54 = vld [vmem:[%s4718_s0 + $0x78] sm:$0xff]  ;;  %v3718_v57 = vld [vmem:[#allocation2 + $0xe4] ss:$8 sps:$4 sm:$0xff]   ;;  %v3720_v58 = vld [vmem:[#allocation2 + $0xe0] ss:$8 sps:$4 sm:$0xff]  }
  0x22   :  { %170 = vmatprep.mubr.bf16.mxu0 %v4057_v0  ;;  %490 = vmatpush1.bf16.msra.mxu1 %v3687_v20  ;;  %v4204_v55 = vpack.c.bf16 %v59_v54, %v58_v53  ;;  %v3717_v56 = vld [vmem:[#allocation2 + $0xd0] ss:$8 sps:$4 sm:$0xff]   ;;  %v3721_v59 = vld [vmem:[#allocation2 + $0xf4] ss:$8 sps:$4 sm:$0xff]   ;;  %v3724_v61 = vld [vmem:[#allocation2 + $0x100] ss:$8 sps:$4 sm:$0xff]  }
  0x23   :  { %491 = vmatprep.subr.bf16.mxu1 %v3688_v21  ;;  %v3723_v60 = vld [vmem:[#allocation2 + $0xf0] ss:$8 sps:$4 sm:$0xff]   ;;  %v3726_v62 = vld [vmem:[#allocation2 + $0x104] ss:$8 sps:$4 sm:$0xff]   ;;  %v3729_v63 = vld [vmem:[#allocation2 + $0x114] ss:$8 sps:$4 sm:$0xff]  }
  0x24   :  { %850 = vmatprep.subr.bf16.mxu0 %v3726_v62  ;;  %v3727_v1 = vld [vmem:[#allocation2 + $0x110] ss:$8 sps:$4 sm:$0xff]   ;;  %v3732_v2 = vld [vmem:[#allocation2 + $0x124] ss:$8 sps:$4 sm:$0xff]   ;;  %v3730_v3 = vld [vmem:[#allocation2 + $0x120] ss:$8 sps:$4 sm:$0xff]  }
  0x25   :  { %851 = vmatpush1.bf16.msra.mxu0 %v3724_v61  ;;  %v3735_v4 = vld [vmem:[#allocation2 + $0x134] ss:$8 sps:$4 sm:$0xff]   ;;  %v3733_v5 = vld [vmem:[#allocation2 + $0x130] ss:$8 sps:$4 sm:$0xff]   ;;  %v3738_v6 = vld [vmem:[#allocation2 + $0x144] ss:$8 sps:$4 sm:$0xff]  }
  0x26   :  { %492 = vmatpush1.bf16.msra.mxu1 %v3690_v23  ;;  %852 = vmatprep.subr.bf16.mxu0 %v3729_v63  ;;  %v3736_v8 = vld [vmem:[#allocation2 + $0x140] ss:$8 sps:$4 sm:$0xff]   ;;  %v3741_v9 = vld [vmem:[#allocation2 + $0x154] ss:$8 sps:$4 sm:$0xff]   ;;  %v3739_v10 = vld [vmem:[#allocation2 + $0x150] ss:$8 sps:$4 sm:$0xff]  }
  0x27   :  { %493 = vmatprep.subr.bf16.mxu1 %v3691_v26  ;;  %v3744_v11 = vld [vmem:[#allocation2 + $0x164] ss:$8 sps:$4 sm:$0xff]   ;;  %v3742_v12 = vld [vmem:[#allocation2 + $0x160] ss:$8 sps:$4 sm:$0xff]   ;;  %v3747_v13 = vld [vmem:[#allocation2 + $0x174] ss:$8 sps:$4 sm:$0xff]   ;;  %v71_v26 = vlaneseq }
  0x28   :  { %v3745_v14 = vld [vmem:[#allocation2 + $0x170] ss:$8 sps:$4 sm:$0xff]   ;;  %v3750_v16 = vld [vmem:[#allocation2 + $0x184] ss:$8 sps:$4 sm:$0xff]   ;;  %v3748_v17 = vld [vmem:[#allocation2 + $0x180] ss:$8 sps:$4 sm:$0xff]  }
  0x29   :  { %3262 = vmatmul.mubr.msk.bf16.gmra.mrb[8].mxu0 %vm86_vm1, %v4149_v22  ;;  %v3753_v18 = vld [vmem:[#allocation2 + $0x194] ss:$8 sps:$4 sm:$0xff]   ;;  %v3751_v19 = vld [vmem:[#allocation2 + $0x190] ss:$8 sps:$4 sm:$0xff]   ;;  %v3756_v20 = vld [vmem:[#allocation2 + $0x1a4] ss:$8 sps:$4 sm:$0xff]  }
  0x2a   :  { %180 = vmatprep.mubr.bf16.mxu0 %v4057_v0  ;;  %494 = vmatpush1.bf16.msra.mxu1 %v3693_v27  ;;  %v3754_v21 = vld [vmem:[#allocation2 + $0x1a0] ss:$8 sps:$4 sm:$0xff]   ;;  %v3759_v23 = vld [vmem:[#allocation2 + $0x1b4] ss:$8 sps:$4 sm:$0xff]   ;;  %v3757_v24 = vld [vmem:[#allocation2 + $0x1b0] ss:$8 sps:$4 sm:$0xff]  }
  0x2b   :  { %495 = vmatprep.subr.bf16.mxu1 %v3694_v28  ;;  %853 = vmatpush1.bf16.msra.mxu0 %v3727_v1  ;;  %v3762_v25 = vld [vmem:[#allocation2 + $0x1c4] ss:$8 sps:$4 sm:$0xff]   ;;  %v3760_v27 = vld [vmem:[#allocation2 + $0x1c0] ss:$8 sps:$4 sm:$0xff]   ;;  %v3765_v28 = vld [vmem:[#allocation2 + $0x1d4] ss:$8 sps:$4 sm:$0xff]  }
  0x2c   :  { %854 = vmatprep.subr.bf16.mxu0 %v3732_v2  ;;  %v69_v33 = vld [vmem:[%s4720_s2] sm:$0x3] }
  0x2e   :  { %496 = vmatpush1.bf16.msra.mxu1 %v3696_v30  ;;  %v72_v30 = vshrl.u32 %v71_v26, 7 }
  0x2f   :  { %497 = vmatprep.subr.bf16.mxu1 %v3697_v31  ;;  %855 = vmatpush1.bf16.msra.mxu0 %v3730_v3  ;;  %v3763_v31 = vld [vmem:[#allocation2 + $0x1d0] ss:$8 sps:$4 sm:$0xff]  }
  0x30   :  { %856 = vmatprep.subr.bf16.mxu0 %v3735_v4  ;;  %v4208_v32 = vsub.s32 0, %v72_v30 }
  0x31   :  { %3263 = vmatmul.mubr.msk.bf16.gmra.mrb[12].mxu0 %vm86_vm1, %v4160_v29 }
  0x32   :  { %190 = vmatprep.mubr.bf16.mxu0 %v4057_v0  ;;  %498 = vmatpush1.bf16.msra.mxu1 %v3699_v34  ;;  %v4213_v34 = vsub.s32 1, %v72_v30 }
  0x33   :  { %499 = vmatprep.subr.bf16.mxu1 %v3700_v35  ;;  %857 = vmatpush1.bf16.msra.mxu0 %v3733_v5  ;;  %v4216_v35 = vrot.slane %v69_v33, %v4208_v32 }
  0x34   :  { %858 = vmatprep.subr.bf16.mxu0 %v3738_v6 }
  0x36   :  { %500 = vmatpush1.bf16.msra.mxu1 %v3702_v37  ;;  %v4219_v37 = vrot.slane %v69_v33, %v4213_v34 }
  0x37   :  { %501 = vmatprep.subr.bf16.mxu1 %v3703_v38  ;;  %859 = vmatpush1.bf16.msra.mxu0 %v3736_v8 }
  0x38   :  { %860 = vmatprep.subr.bf16.mxu0 %v3741_v9 }
  0x39   :  { %3264 = vmatmul.mubr.msk.bf16.gmra.mrb[16].mxu0 %vm86_vm1, %v4171_v36 }
  0x3a   :  { %200 = vmatprep.mubr.bf16.mxu0 %v4057_v0  ;;  %502 = vmatpush1.bf16.msra.mxu1 %v3705_v41 }
  0x3b   :  { %503 = vmatprep.subr.bf16.mxu1 %v3706_v42  ;;  %861 = vmatpush1.bf16.msra.mxu0 %v3739_v10 }
  0x3c   :  { %862 = vmatprep.subr.bf16.mxu0 %v3744_v11 }
  0x3e   :  { %504 = vmatpush1.bf16.msra.mxu1 %v3708_v44 }
  0x3f   :  { %505 = vmatprep.subr.bf16.mxu1 %v3709_v45  ;;  %863 = vmatpush1.bf16.msra.mxu0 %v3742_v12 }
  0x40   :  { %864 = vmatprep.subr.bf16.mxu0 %v3747_v13 }
  0x41   :  { %3265 = vmatmul.mubr.msk.bf16.gmra.mrb[20].mxu0 %vm86_vm1, %v4182_v43 }
  0x42   :  { %210 = vmatprep.mubr.bf16.mxu0 %v4057_v0  ;;  %506 = vmatpush1.bf16.msra.mxu1 %v3711_v48 }
  0x43   :  { %507 = vmatprep.subr.bf16.mxu1 %v3712_v49  ;;  %865 = vmatpush1.bf16.msra.mxu0 %v3745_v14 }
  0x44   :  { %866 = vmatprep.subr.bf16.mxu0 %v3750_v16 }
  0x46   :  { %508 = vmatpush1.bf16.msra.mxu1 %v3714_v51 }
  0x47   :  { %509 = vmatprep.subr.bf16.mxu1 %v3715_v52  ;;  %867 = vmatpush1.bf16.msra.mxu0 %v3748_v17 }
  0x48   :  { %868 = vmatprep.subr.bf16.mxu0 %v3753_v18 }
  0x49   :  { %3266 = vmatmul.mubr.msk.bf16.gmra.mrb[24].mxu0 %vm86_vm1, %v4193_v50 }
  0x4a   :  { %220 = vmatprep.mubr.bf16.mxu0 %v4057_v0  ;;  %510 = vmatpush1.bf16.msra.mxu1 %v3717_v56 }
  0x4b   :  { %511 = vmatprep.subr.bf16.mxu1 %v3718_v57  ;;  %869 = vmatpush1.bf16.msra.mxu0 %v3751_v19 }
  0x4c   :  { %870 = vmatprep.subr.bf16.mxu0 %v3756_v20 }
  0x4e   :  { %512 = vmatpush1.bf16.msra.mxu1 %v3720_v58 }
  0x4f   :  { %513 = vmatprep.subr.bf16.mxu1 %v3721_v59  ;;  %871 = vmatpush1.bf16.msra.mxu0 %v3754_v21 }
  0x50   :  { %872 = vmatprep.subr.bf16.mxu0 %v3759_v23 }
  0x51   :  { %3267 = vmatmul.mubr.msk.bf16.gmra.mrb[28].mxu0 %vm86_vm1, %v4204_v55 }
  0x52   :  { %514 = vmatpush1.bf16.msra.mxu1 %v3723_v60 }
  0x53   :  { %873 = vmatpush1.bf16.msra.mxu0 %v3757_v24 }
  0x54   :  { %874 = vmatprep.subr.bf16.mxu0 %v3762_v25 }
  0x57   :  { %875 = vmatpush1.bf16.msra.mxu0 %v3760_v27 }
  0x58   :  { %876 = vmatprep.subr.bf16.mxu0 %v3765_v28 }
  0x5b   :  { %877 = vmatpush1.bf16.msra.mxu0 %v3763_v31 }
  0xec   :  { %v152_v38 = vpop.f32.mrb[0].mxu0 }
  0xed   :  { %v153_v39 = vadd.f32 %v152_v38, %v4216_v35  ;;  %v154_v40 = vpop.f32.mrb[1].mxu0 }
  0xee   :  { %v155_v41 = vadd.f32 %v154_v40, %v4219_v37  ;;  %v156_v42 = vpop.f32.mrb[2].mxu0 }
  0xef   :  { %v157_v44 = vadd.f32 %v156_v42, %v4216_v35  ;;  %v158_v45 = vpop.f32.mrb[3].mxu0  ;;  %v231_v47 = vmax.f32 %v153_v39, 0.0 }
  0xf0   :  { %v159_v46 = vadd.f32 %v158_v45, %v4219_v37  ;;  %v232_v49 = vmax.f32 %v155_v41, 0.0 }
  0xf1   :  { %v233_v48 = vmax.f32 %v157_v44, 0.0 }
  0xf2   :  { %v234_v51 = vmax.f32 %v159_v46, 0.0 }
  0xf3   :  { %v263_v52 = vpack.c.bf16 %v233_v48, %v231_v47 }
  0xf4   :  { %v162_v53 = vpop.f32.mrb[4].mxu0  ;;  %v264_v54 = vpack.c.bf16 %v234_v51, %v232_v49 }
  0xf5   :  { %v163_v56 = vadd.f32 %v162_v53, %v4216_v35  ;;  %v164_v57 = vpop.f32.mrb[5].mxu0 }
  0xf6   :  { %v165_v58 = vadd.f32 %v164_v57, %v4219_v37  ;;  %v166_v59 = vpop.f32.mrb[6].mxu0  ;;  %515 = vmatprep.mubr.bf16.mxu1 %v264_v54 }
  0xf7   :  { %v167_v60 = vadd.f32 %v166_v59, %v4216_v35  ;;  %v168_v61 = vpop.f32.mrb[7].mxu0  ;;  %516 = vmatmul.mubr.bf16.vlgmr.msra.gmra.mrb[0].mxu1 %v263_v52  ;;  %v235_v63 = vmax.f32 %v163_v56, 0.0 }
  0xf8   :  { %v169_v62 = vadd.f32 %v168_v61, %v4219_v37  ;;  %v236_v2 = vmax.f32 %v165_v58, 0.0 }
  0xf9   :  { %v237_v1 = vmax.f32 %v167_v60, 0.0 }
  0xfa   :  { %v238_v3 = vmax.f32 %v169_v62, 0.0 }
  0xfb   :  { %v265_v4 = vpack.c.bf16 %v237_v1, %v235_v63 }
  0xfc   :  { %v266_v5 = vpack.c.bf16 %v238_v3, %v236_v2  ;;  %v172_v6 = vpop.f32.mrb[8].mxu0 }
  0xfd   :  { %v173_v8 = vadd.f32 %v172_v6, %v4216_v35  ;;  %v174_v9 = vpop.f32.mrb[9].mxu0 }
  0xfe   :  { %v175_v10 = vadd.f32 %v174_v9, %v4219_v37  ;;  %v176_v11 = vpop.f32.mrb[10].mxu0  ;;  %525 = vmatprep.mubr.bf16.mxu1 %v266_v5 }
  0xff   :  { %v177_v12 = vadd.f32 %v176_v11, %v4216_v35  ;;  %v178_v13 = vpop.f32.mrb[11].mxu0  ;;  %526 = vmatmul.mubr.bf16.gmra.mrb[4].mxu1 %v265_v4  ;;  %v239_v16 = vmax.f32 %v173_v8, 0.0 }
 0x100   :  { %v179_v14 = vadd.f32 %v178_v13, %v4219_v37  ;;  %v240_v18 = vmax.f32 %v175_v10, 0.0 }
 0x101   :  { %v241_v17 = vmax.f32 %v177_v12, 0.0 }
 0x102   :  { %v242_v19 = vmax.f32 %v179_v14, 0.0 }
 0x103   :  { %v267_v20 = vpack.c.bf16 %v241_v17, %v239_v16 }
 0x104   :  { %v268_v21 = vpack.c.bf16 %v242_v19, %v240_v18  ;;  %v182_v23 = vpop.f32.mrb[12].mxu0 }
 0x105   :  { %v183_v24 = vadd.f32 %v182_v23, %v4216_v35  ;;  %v184_v25 = vpop.f32.mrb[13].mxu0 }
 0x106   :  { %v185_v26 = vadd.f32 %v184_v25, %v4219_v37  ;;  %v186_v27 = vpop.f32.mrb[14].mxu0  ;;  %535 = vmatprep.mubr.bf16.mxu1 %v268_v21 }
 0x107   :  { %v187_v28 = vadd.f32 %v186_v27, %v4216_v35  ;;  %v188_v30 = vpop.f32.mrb[15].mxu0  ;;  %536 = vmatmul.mubr.bf16.gmra.mrb[8].mxu1 %v267_v20  ;;  %v243_v33 = vmax.f32 %v183_v24, 0.0 }
 0x108   :  { %v189_v31 = vadd.f32 %v188_v30, %v4219_v37  ;;  %v244_v39 = vmax.f32 %v185_v26, 0.0 }
 0x109   :  { %v245_v38 = vmax.f32 %v187_v28, 0.0 }
 0x10a   :  { %v246_v40 = vmax.f32 %v189_v31, 0.0 }
 0x10b   :  { %v269_v41 = vpack.c.bf16 %v245_v38, %v243_v33 }
 0x10c   :  { %v270_v42 = vpack.c.bf16 %v246_v40, %v244_v39  ;;  %v192_v44 = vpop.f32.mrb[16].mxu0 }
 0x10d   :  { %v193_v45 = vadd.f32 %v192_v44, %v4216_v35  ;;  %v194_v46 = vpop.f32.mrb[17].mxu0 }
 0x10e   :  { %v195_v47 = vadd.f32 %v194_v46, %v4219_v37  ;;  %v196_v48 = vpop.f32.mrb[18].mxu0  ;;  %545 = vmatprep.mubr.bf16.mxu1 %v270_v42 }
 0x10f   :  { %v197_v49 = vadd.f32 %v196_v48, %v4216_v35  ;;  %v198_v51 = vpop.f32.mrb[19].mxu0  ;;  %546 = vmatmul.mubr.bf16.gmra.mrb[12].mxu1 %v269_v41  ;;  %v247_v53 = vmax.f32 %v193_v45, 0.0 }
 0x110   :  { %v199_v52 = vadd.f32 %v198_v51, %v4219_v37  ;;  %v248_v56 = vmax.f32 %v195_v47, 0.0  ;;  %v3766_v51 = vld [vmem:[#allocation2 + $0x1e0] ss:$8 sps:$4 sm:$0xff]  }
 0x111   :  { %v249_v54 = vmax.f32 %v197_v49, 0.0  ;;  %v3768_v49 = vld [vmem:[#allocation2 + $0x1e4] ss:$8 sps:$4 sm:$0xff]  }
 0x112   :  { %v250_v57 = vmax.f32 %v199_v52, 0.0  ;;  %878 = vmatprep.subr.bf16.mxu0 %v3768_v49  ;;  %v3771_v52 = vld [vmem:[#allocation2 + $0x1f4] ss:$8 sps:$4 sm:$0xff]  }
 0x113   :  { %v271_v58 = vpack.c.bf16 %v249_v54, %v247_v53  ;;  %879 = vmatpush1.bf16.msra.mxu0 %v3766_v51  ;;  %v3769_v53 = vld [vmem:[#allocation2 + $0x1f0] ss:$8 sps:$4 sm:$0xff]   ;;  %v3774_v54 = vld [vmem:[#allocation2 + $0x204] ss:$8 sps:$4 sm:$0xff]  }
 0x114   :  { %v272_v59 = vpack.c.bf16 %v250_v57, %v248_v56  ;;  %v202_v60 = vpop.f32.mrb[20].mxu0  ;;  %880 = vmatprep.subr.bf16.mxu0 %v3771_v52  ;;  %v3777_v56 = vld [vmem:[#allocation2 + $0x214] ss:$8 sps:$4 sm:$0xff]   ;;  %1217 = vmatprep.subr.bf16.mxu1 %v3774_v54  ;;  %v3780_v57 = vld [vmem:[#allocation2 + $0x224] ss:$8 sps:$4 sm:$0xff]  }
 0x115   :  { %v203_v61 = vadd.f32 %v202_v60, %v4216_v35  ;;  %v204_v62 = vpop.f32.mrb[21].mxu0  ;;  %v3781_v60 = vld [vmem:[#allocation2 + $0x230] ss:$8 sps:$4 sm:$0xff]  }
 0x116   :  { %v205_v63 = vadd.f32 %v204_v62, %v4219_v37  ;;  %v206_v1 = vpop.f32.mrb[22].mxu0  ;;  %555 = vmatprep.mubr.bf16.mxu1 %v272_v59  ;;  %v3783_v59 = vld [vmem:[#allocation2 + $0x234] ss:$8 sps:$4 sm:$0xff]   ;;  %v3784_v62 = vld [vmem:[#allocation2 + $0x240] ss:$8 sps:$4 sm:$0xff]  }
 0x117   :  { %v207_v2 = vadd.f32 %v206_v1, %v4216_v35  ;;  %v208_v3 = vpop.f32.mrb[23].mxu0  ;;  %556 = vmatmul.mubr.bf16.gmra.mrb[16].mxu1 %v271_v58  ;;  %v251_v5 = vmax.f32 %v203_v61, 0.0  ;;  %881 = vmatpush1.bf16.msra.mxu0 %v3769_v53  ;;  %v3778_v58 = vld [vmem:[#allocation2 + $0x220] ss:$8 sps:$4 sm:$0xff]   ;;  %v3786_v61 = vld [vmem:[#allocation2 + $0x244] ss:$8 sps:$4 sm:$0xff]  }
 0x118   :  { %v209_v4 = vadd.f32 %v208_v3, %v4219_v37  ;;  %v252_v8 = vmax.f32 %v205_v63, 0.0  ;;  %v3789_v63 = vld [vmem:[#allocation2 + $0x254] ss:$8 sps:$4 sm:$0xff]   ;;  %v3787_v1 = vld [vmem:[#allocation2 + $0x250] ss:$8 sps:$4 sm:$0xff]  }
 0x119   :  { %v253_v6 = vmax.f32 %v207_v2, 0.0  ;;  %v3792_v2 = vld [vmem:[#allocation2 + $0x264] ss:$8 sps:$4 sm:$0xff]   ;;  %v3790_v3 = vld [vmem:[#allocation2 + $0x260] ss:$8 sps:$4 sm:$0xff]  }
 0x11a   :  { %v254_v9 = vmax.f32 %v209_v4, 0.0  ;;  %v3795_v4 = vld [vmem:[#allocation2 + $0x274] ss:$8 sps:$4 sm:$0xff]  }
 0x11b   :  { %v273_v10 = vpack.c.bf16 %v253_v6, %v251_v5  ;;  %v3793_v5 = vld [vmem:[#allocation2 + $0x270] ss:$8 sps:$4 sm:$0xff]   ;;  %v3798_v6 = vld [vmem:[#allocation2 + $0x284] ss:$8 sps:$4 sm:$0xff]  }
 0x11c   :  { %v274_v11 = vpack.c.bf16 %v254_v9, %v252_v8  ;;  %v212_v12 = vpop.f32.mrb[24].mxu0  ;;  %v3796_v8 = vld [vmem:[#allocation2 + $0x280] ss:$8 sps:$4 sm:$0xff]   ;;  %v3801_v9 = vld [vmem:[#allocation2 + $0x294] ss:$8 sps:$4 sm:$0xff]  }
 0x11d   :  { %v213_v13 = vadd.f32 %v212_v12, %v4216_v35  ;;  %v214_v14 = vpop.f32.mrb[25].mxu0  ;;  %v3802_v12 = vld [vmem:[#allocation2 + $0x2a0] ss:$8 sps:$4 sm:$0xff]  }
 0x11e   :  { %v215_v16 = vadd.f32 %v214_v14, %v4219_v37  ;;  %v216_v17 = vpop.f32.mrb[26].mxu0  ;;  %565 = vmatprep.mubr.bf16.mxu1 %v274_v11  ;;  %v3804_v11 = vld [vmem:[#allocation2 + $0x2a4] ss:$8 sps:$4 sm:$0xff]   ;;  %v3805_v14 = vld [vmem:[#allocation2 + $0x2b0] ss:$8 sps:$4 sm:$0xff]  }
 0x11f   :  { %v217_v18 = vadd.f32 %v216_v17, %v4216_v35  ;;  %v218_v19 = vpop.f32.mrb[27].mxu0  ;;  %566 = vmatmul.mubr.bf16.gmra.mrb[20].mxu1 %v273_v10  ;;  %v255_v21 = vmax.f32 %v213_v13, 0.0  ;;  %v3799_v10 = vld [vmem:[#allocation2 + $0x290] ss:$8 sps:$4 sm:$0xff]   ;;  %v3807_v13 = vld [vmem:[#allocation2 + $0x2b4] ss:$8 sps:$4 sm:$0xff]  }
 0x120   :  { %v219_v20 = vadd.f32 %v218_v19, %v4219_v37  ;;  %v256_v24 = vmax.f32 %v215_v16, 0.0  ;;  %v3810_v16 = vld [vmem:[#allocation2 + $0x2c4] ss:$8 sps:$4 sm:$0xff]   ;;  %v3808_v17 = vld [vmem:[#allocation2 + $0x2c0] ss:$8 sps:$4 sm:$0xff]  }
 0x121   :  { %v257_v23 = vmax.f32 %v217_v18, 0.0  ;;  %v3813_v18 = vld [vmem:[#allocation2 + $0x2d4] ss:$8 sps:$4 sm:$0xff]   ;;  %v3811_v19 = vld [vmem:[#allocation2 + $0x2d0] ss:$8 sps:$4 sm:$0xff]  }
 0x122   :  { %v258_v25 = vmax.f32 %v219_v20, 0.0  ;;  %v311_v20 = vld [vmem:[%s4722_s4] sm:$0x3] }
 0x123   :  { %v275_v26 = vpack.c.bf16 %v257_v23, %v255_v21  ;;  %v4257_v21 = vrot.slane %v311_v20, %v4208_v32  ;;  %v4260_v23 = vrot.slane %v311_v20, %v4213_v34 }
 0x124   :  { %v276_v27 = vpack.c.bf16 %v258_v25, %v256_v24  ;;  %v222_v28 = vpop.f32.mrb[28].mxu0 }
 0x125   :  { %v223_v30 = vadd.f32 %v222_v28, %v4216_v35  ;;  %v224_v31 = vpop.f32.mrb[29].mxu0 }
 0x126   :  { %v225_v33 = vadd.f32 %v224_v31, %v4219_v37  ;;  %v226_v38 = vpop.f32.mrb[30].mxu0  ;;  %575 = vmatprep.mubr.bf16.mxu1 %v276_v27 }
 0x127   :  { %v227_v39 = vadd.f32 %v226_v38, %v4216_v35  ;;  %v228_v40 = vpop.f32.mrb[31].mxu0  ;;  %576 = vmatmul.mubr.bf16.gmra.mrb[24].mxu1 %v275_v26  ;;  %v259_v42 = vmax.f32 %v223_v30, 0.0  ;;  %v3772_v35 = vld [vmem:[#allocation2 + $0x200] ss:$8 sps:$4 sm:$0xff]  }
 0x128   :  { %v229_v41 = vadd.f32 %v228_v40, %v4219_v37  ;;  %v260_v45 = vmax.f32 %v225_v33, 0.0  ;;  %1218 = vmatpush1.bf16.msra.mxu1 %v3772_v35  ;;  %v3775_v37 = vld [vmem:[#allocation2 + $0x210] ss:$8 sps:$4 sm:$0xff]  }
 0x129   :  { %v261_v44 = vmax.f32 %v227_v39, 0.0  ;;  %1219 = vmatprep.subr.bf16.mxu1 %v3777_v56 }
 0x12a   :  { %v262_v46 = vmax.f32 %v229_v41, 0.0 }
 0x12b   :  { %v277_v47 = vpack.c.bf16 %v261_v44, %v259_v42 }
 0x12c   :  { %v278_v48 = vpack.c.bf16 %v262_v46, %v260_v45  ;;  %1220 = vmatpush1.bf16.msra.mxu1 %v3775_v37 }
 0x12d   :  { %1221 = vmatprep.subr.bf16.mxu1 %v3780_v57 }
 0x12e   :  { %585 = vmatprep.mubr.bf16.mxu1 %v278_v48 }
 0x12f   :  { %586 = vmatmul.mubr.bf16.gmra.mrb[28].mxu1 %v277_v47 }
 0x130   :  { %1222 = vmatpush1.bf16.msra.mxu1 %v3778_v58 }
 0x131   :  { %1223 = vmatprep.subr.bf16.mxu1 %v3783_v59 }
 0x134   :  { %1224 = vmatpush1.bf16.msra.mxu1 %v3781_v60 }
 0x135   :  { %1225 = vmatprep.subr.bf16.mxu1 %v3786_v61 }
 0x138   :  { %1226 = vmatpush1.bf16.msra.mxu1 %v3784_v62 }
 0x139   :  { %1227 = vmatprep.subr.bf16.mxu1 %v3789_v63 }
 0x13c   :  { %1228 = vmatpush1.bf16.msra.mxu1 %v3787_v1 }
 0x13d   :  { %1229 = vmatprep.subr.bf16.mxu1 %v3792_v2 }
 0x140   :  { %1230 = vmatpush1.bf16.msra.mxu1 %v3790_v3 }
 0x141   :  { %1231 = vmatprep.subr.bf16.mxu1 %v3795_v4 }
 0x144   :  { %1232 = vmatpush1.bf16.msra.mxu1 %v3793_v5 }
 0x145   :  { %1233 = vmatprep.subr.bf16.mxu1 %v3798_v6 }
 0x148   :  { %1234 = vmatpush1.bf16.msra.mxu1 %v3796_v8 }
 0x149   :  { %1235 = vmatprep.subr.bf16.mxu1 %v3801_v9 }
 0x14c   :  { %1236 = vmatpush1.bf16.msra.mxu1 %v3799_v10 }
 0x14d   :  { %1237 = vmatprep.subr.bf16.mxu1 %v3804_v11 }
 0x150   :  { %1238 = vmatpush1.bf16.msra.mxu1 %v3802_v12 }
 0x151   :  { %1239 = vmatprep.subr.bf16.mxu1 %v3807_v13 }
 0x154   :  { %1240 = vmatpush1.bf16.msra.mxu1 %v3805_v14 }
 0x155   :  { %1241 = vmatprep.subr.bf16.mxu1 %v3810_v16 }
 0x158   :  { %1242 = vmatpush1.bf16.msra.mxu1 %v3808_v17 }
 0x159   :  { %1243 = vmatprep.subr.bf16.mxu1 %v3813_v18 }
 0x15c   :  { %1244 = vmatpush1.bf16.msra.mxu1 %v3811_v19 }
 0x1ca   :  { %v517_v24 = vpop.f32.mrb[0].mxu1 }
 0x1cb   :  { %v518_v25 = vadd.f32 %v517_v24, %v4257_v21  ;;  %v519_v26 = vpop.f32.mrb[1].mxu1 }
 0x1cc   :  { %v520_v27 = vadd.f32 %v519_v26, %v4260_v23  ;;  %v521_v28 = vpop.f32.mrb[2].mxu1 }
 0x1cd   :  { %v522_v30 = vadd.f32 %v521_v28, %v4257_v21  ;;  %v523_v31 = vpop.f32.mrb[3].mxu1  ;;  %v596_v38 = vmax.f32 %v518_v25, 0.0 }
 0x1ce   :  { %v524_v33 = vadd.f32 %v523_v31, %v4260_v23  ;;  %v597_v40 = vmax.f32 %v520_v27, 0.0 }
 0x1cf   :  { %v598_v39 = vmax.f32 %v522_v30, 0.0 }
 0x1d0   :  { %v599_v41 = vmax.f32 %v524_v33, 0.0 }
 0x1d1   :  { %v628_v42 = vpack.c.bf16 %v598_v39, %v596_v38 }
 0x1d2   :  { %v629_v44 = vpack.c.bf16 %v599_v41, %v597_v40  ;;  %v527_v45 = vpop.f32.mrb[4].mxu1 }
 0x1d3   :  { %v528_v46 = vadd.f32 %v527_v45, %v4257_v21  ;;  %v529_v47 = vpop.f32.mrb[5].mxu1 }
 0x1d4   :  { %v530_v48 = vadd.f32 %v529_v47, %v4260_v23  ;;  %v531_v49 = vpop.f32.mrb[6].mxu1  ;;  %882 = vmatprep.mubr.bf16.mxu0 %v629_v44 }
 0x1d5   :  { %v532_v51 = vadd.f32 %v531_v49, %v4257_v21  ;;  %v533_v52 = vpop.f32.mrb[7].mxu1  ;;  %883 = vmatmul.mubr.bf16.vlgmr.msra.gmra.mrb[32].mxu0 %v628_v42  ;;  %v600_v35 = vmax.f32 %v528_v46, 0.0 }
 0x1d6   :  { %v534_v53 = vadd.f32 %v533_v52, %v4260_v23  ;;  %v601_v56 = vmax.f32 %v530_v48, 0.0 }
 0x1d7   :  { %v602_v54 = vmax.f32 %v532_v51, 0.0 }
 0x1d8   :  { %v603_v37 = vmax.f32 %v534_v53, 0.0 }
 0x1d9   :  { %v630_v57 = vpack.c.bf16 %v602_v54, %v600_v35 }
 0x1da   :  { %v631_v58 = vpack.c.bf16 %v603_v37, %v601_v56  ;;  %v537_v59 = vpop.f32.mrb[8].mxu1 }
 0x1db   :  { %v538_v60 = vadd.f32 %v537_v59, %v4257_v21  ;;  %v539_v61 = vpop.f32.mrb[9].mxu1 }
 0x1dc   :  { %v540_v62 = vadd.f32 %v539_v61, %v4260_v23  ;;  %v541_v63 = vpop.f32.mrb[10].mxu1  ;;  %892 = vmatprep.mubr.bf16.mxu0 %v631_v58 }
 0x1dd   :  { %v542_v1 = vadd.f32 %v541_v63, %v4257_v21  ;;  %v543_v2 = vpop.f32.mrb[11].mxu1  ;;  %893 = vmatmul.mubr.bf16.gmra.mrb[36].mxu0 %v630_v57  ;;  %v604_v4 = vmax.f32 %v538_v60, 0.0 }
 0x1de   :  { %v544_v3 = vadd.f32 %v543_v2, %v4260_v23  ;;  %v605_v6 = vmax.f32 %v540_v62, 0.0 }
 0x1df   :  { %v606_v5 = vmax.f32 %v542_v1, 0.0 }
 0x1e0   :  { %v607_v8 = vmax.f32 %v544_v3, 0.0 }
 0x1e1   :  { %v632_v9 = vpack.c.bf16 %v606_v5, %v604_v4 }
 0x1e2   :  { %v633_v10 = vpack.c.bf16 %v607_v8, %v605_v6  ;;  %v547_v11 = vpop.f32.mrb[12].mxu1 }
 0x1e3   :  { %v548_v12 = vadd.f32 %v547_v11, %v4257_v21  ;;  %v549_v13 = vpop.f32.mrb[13].mxu1 }
 0x1e4   :  { %v550_v14 = vadd.f32 %v549_v13, %v4260_v23  ;;  %v551_v16 = vpop.f32.mrb[14].mxu1  ;;  %902 = vmatprep.mubr.bf16.mxu0 %v633_v10 }
 0x1e5   :  { %v552_v17 = vadd.f32 %v551_v16, %v4257_v21  ;;  %v553_v18 = vpop.f32.mrb[15].mxu1  ;;  %903 = vmatmul.mubr.bf16.gmra.mrb[40].mxu0 %v632_v9  ;;  %v608_v20 = vmax.f32 %v548_v12, 0.0 }
 0x1e6   :  { %v554_v19 = vadd.f32 %v553_v18, %v4260_v23  ;;  %v609_v25 = vmax.f32 %v550_v14, 0.0 }
 0x1e7   :  { %v610_v24 = vmax.f32 %v552_v17, 0.0 }
 0x1e8   :  { %v611_v26 = vmax.f32 %v554_v19, 0.0 }
 0x1e9   :  { %v634_v27 = vpack.c.bf16 %v610_v24, %v608_v20 }
 0x1ea   :  { %v635_v28 = vpack.c.bf16 %v611_v26, %v609_v25  ;;  %v557_v30 = vpop.f32.mrb[16].mxu1 }
 0x1eb   :  { %v558_v31 = vadd.f32 %v557_v30, %v4257_v21  ;;  %v559_v33 = vpop.f32.mrb[17].mxu1 }
 0x1ec   :  { %v560_v38 = vadd.f32 %v559_v33, %v4260_v23  ;;  %v561_v39 = vpop.f32.mrb[18].mxu1  ;;  %912 = vmatprep.mubr.bf16.mxu0 %v635_v28 }
 0x1ed   :  { %v562_v40 = vadd.f32 %v561_v39, %v4257_v21  ;;  %v563_v41 = vpop.f32.mrb[19].mxu1  ;;  %913 = vmatmul.mubr.bf16.gmra.mrb[44].mxu0 %v634_v27  ;;  %v612_v44 = vmax.f32 %v558_v31, 0.0 }
 0x1ee   :  { %v564_v42 = vadd.f32 %v563_v41, %v4260_v23  ;;  %v613_v46 = vmax.f32 %v560_v38, 0.0  ;;  %v3814_v41 = vld [vmem:[#allocation2 + $0x2e0] ss:$8 sps:$4 sm:$0xff]  }
 0x1ef   :  { %v614_v45 = vmax.f32 %v562_v40, 0.0  ;;  %v3816_v40 = vld [vmem:[#allocation2 + $0x2e4] ss:$8 sps:$4 sm:$0xff]  }
 0x1f0   :  { %v615_v47 = vmax.f32 %v564_v42, 0.0  ;;  %1245 = vmatprep.subr.bf16.mxu1 %v3816_v40  ;;  %v3819_v42 = vld [vmem:[#allocation2 + $0x2f4] ss:$8 sps:$4 sm:$0xff]  }
 0x1f1   :  { %v636_v48 = vpack.c.bf16 %v614_v45, %v612_v44  ;;  %1246 = vmatpush1.bf16.msra.mxu1 %v3814_v41  ;;  %v3817_v44 = vld [vmem:[#allocation2 + $0x2f0] ss:$8 sps:$4 sm:$0xff]   ;;  %v3822_v45 = vld [vmem:[#allocation2 + $0x304] ss:$8 sps:$4 sm:$0xff]  }
 0x1f2   :  { %v637_v49 = vpack.c.bf16 %v615_v47, %v613_v46  ;;  %v567_v51 = vpop.f32.mrb[20].mxu1  ;;  %1247 = vmatprep.subr.bf16.mxu1 %v3819_v42  ;;  %v3825_v46 = vld [vmem:[#allocation2 + $0x314] ss:$8 sps:$4 sm:$0xff]   ;;  %1584 = vmatprep.subr.bf16.mxu0 %v3822_v45  ;;  %v3828_v47 = vld [vmem:[#allocation2 + $0x324] ss:$8 sps:$4 sm:$0xff]  }
 0x1f3   :  { %v568_v52 = vadd.f32 %v567_v51, %v4257_v21  ;;  %v569_v53 = vpop.f32.mrb[21].mxu1  ;;  %v3829_v51 = vld [vmem:[#allocation2 + $0x330] ss:$8 sps:$4 sm:$0xff]  }
 0x1f4   :  { %v570_v35 = vadd.f32 %v569_v53, %v4260_v23  ;;  %v571_v54 = vpop.f32.mrb[22].mxu1  ;;  %922 = vmatprep.mubr.bf16.mxu0 %v637_v49  ;;  %v3831_v49 = vld [vmem:[#allocation2 + $0x334] ss:$8 sps:$4 sm:$0xff]   ;;  %v3832_v53 = vld [vmem:[#allocation2 + $0x340] ss:$8 sps:$4 sm:$0xff]  }
 0x1f5   :  { %v572_v56 = vadd.f32 %v571_v54, %v4257_v21  ;;  %v573_v37 = vpop.f32.mrb[23].mxu1  ;;  %923 = vmatmul.mubr.bf16.gmra.mrb[48].mxu0 %v636_v48  ;;  %v616_v58 = vmax.f32 %v568_v52, 0.0  ;;  %1248 = vmatpush1.bf16.msra.mxu1 %v3817_v44  ;;  %v3826_v48 = vld [vmem:[#allocation2 + $0x320] ss:$8 sps:$4 sm:$0xff]   ;;  %v3834_v52 = vld [vmem:[#allocation2 + $0x344] ss:$8 sps:$4 sm:$0xff]  }
 0x1f6   :  { %v574_v57 = vadd.f32 %v573_v37, %v4260_v23  ;;  %v617_v60 = vmax.f32 %v570_v35, 0.0  ;;  %v3837_v35 = vld [vmem:[#allocation2 + $0x354] ss:$8 sps:$4 sm:$0xff]   ;;  %v3835_v54 = vld [vmem:[#allocation2 + $0x350] ss:$8 sps:$4 sm:$0xff]  }
 0x1f7   :  { %v618_v59 = vmax.f32 %v572_v56, 0.0  ;;  %v3840_v56 = vld [vmem:[#allocation2 + $0x364] ss:$8 sps:$4 sm:$0xff]   ;;  %v3838_v37 = vld [vmem:[#allocation2 + $0x360] ss:$8 sps:$4 sm:$0xff]  }
 0x1f8   :  { %v619_v61 = vmax.f32 %v574_v57, 0.0  ;;  %v3843_v57 = vld [vmem:[#allocation2 + $0x374] ss:$8 sps:$4 sm:$0xff]  }
 0x1f9   :  { %v638_v62 = vpack.c.bf16 %v618_v59, %v616_v58  ;;  %v3841_v58 = vld [vmem:[#allocation2 + $0x370] ss:$8 sps:$4 sm:$0xff]   ;;  %v3846_v59 = vld [vmem:[#allocation2 + $0x384] ss:$8 sps:$4 sm:$0xff]  }
 0x1fa   :  { %v639_v63 = vpack.c.bf16 %v619_v61, %v617_v60  ;;  %v577_v1 = vpop.f32.mrb[24].mxu1  ;;  %v3844_v60 = vld [vmem:[#allocation2 + $0x380] ss:$8 sps:$4 sm:$0xff]   ;;  %v3849_v61 = vld [vmem:[#allocation2 + $0x394] ss:$8 sps:$4 sm:$0xff]  }
 0x1fb   :  { %v578_v2 = vadd.f32 %v577_v1, %v4257_v21  ;;  %v579_v3 = vpop.f32.mrb[25].mxu1  ;;  %v3850_v1 = vld [vmem:[#allocation2 + $0x3a0] ss:$8 sps:$4 sm:$0xff]  }
 0x1fc   :  { %v580_v4 = vadd.f32 %v579_v3, %v4260_v23  ;;  %v581_v5 = vpop.f32.mrb[26].mxu1  ;;  %932 = vmatprep.mubr.bf16.mxu0 %v639_v63  ;;  %v3852_v63 = vld [vmem:[#allocation2 + $0x3a4] ss:$8 sps:$4 sm:$0xff]   ;;  %v3853_v3 = vld [vmem:[#allocation2 + $0x3b0] ss:$8 sps:$4 sm:$0xff]  }
 0x1fd   :  { %v582_v6 = vadd.f32 %v581_v5, %v4257_v21  ;;  %v583_v8 = vpop.f32.mrb[27].mxu1  ;;  %933 = vmatmul.mubr.bf16.gmra.mrb[52].mxu0 %v638_v62  ;;  %v620_v10 = vmax.f32 %v578_v2, 0.0  ;;  %v3847_v62 = vld [vmem:[#allocation2 + $0x390] ss:$8 sps:$4 sm:$0xff]   ;;  %v3855_v2 = vld [vmem:[#allocation2 + $0x3b4] ss:$8 sps:$4 sm:$0xff]  }
 0x1fe   :  { %v584_v9 = vadd.f32 %v583_v8, %v4260_v23  ;;  %v621_v12 = vmax.f32 %v580_v4, 0.0  ;;  %v3858_v4 = vld [vmem:[#allocation2 + $0x3c4] ss:$8 sps:$4 sm:$0xff]   ;;  %v3856_v5 = vld [vmem:[#allocation2 + $0x3c0] ss:$8 sps:$4 sm:$0xff]  }
 0x1ff   :  { %v622_v11 = vmax.f32 %v582_v6, 0.0  ;;  %v3861_v6 = vld [vmem:[#allocation2 + $0x3d4] ss:$8 sps:$4 sm:$0xff]   ;;  %v3859_v8 = vld [vmem:[#allocation2 + $0x3d0] ss:$8 sps:$4 sm:$0xff]  }
 0x200   :  { %v623_v13 = vmax.f32 %v584_v9, 0.0  ;;  %v3300_v9 = vld [vmem:[%s4722_s4 + $0x2] sm:$0x3] }
 0x201   :  { %v640_v14 = vpack.c.bf16 %v622_v11, %v620_v10  ;;  %v4298_v10 = vrot.slane %v3300_v9, %v4208_v32  ;;  %v4301_v11 = vrot.slane %v3300_v9, %v4213_v34 }
 0x202   :  { %v641_v16 = vpack.c.bf16 %v623_v13, %v621_v12  ;;  %v587_v17 = vpop.f32.mrb[28].mxu1 }
 0x203   :  { %v588_v18 = vadd.f32 %v587_v17, %v4257_v21  ;;  %v589_v19 = vpop.f32.mrb[29].mxu1 }
 0x204   :  { %v590_v20 = vadd.f32 %v589_v19, %v4260_v23  ;;  %v591_v24 = vpop.f32.mrb[30].mxu1  ;;  %942 = vmatprep.mubr.bf16.mxu0 %v641_v16 }
 0x205   :  { %v592_v25 = vadd.f32 %v591_v24, %v4257_v21  ;;  %v593_v26 = vpop.f32.mrb[31].mxu1  ;;  %943 = vmatmul.mubr.bf16.gmra.mrb[56].mxu0 %v640_v14  ;;  %v624_v28 = vmax.f32 %v588_v18, 0.0  ;;  %v3820_v21 = vld [vmem:[#allocation2 + $0x300] ss:$8 sps:$4 sm:$0xff]  }
 0x206   :  { %v594_v27 = vadd.f32 %v593_v26, %v4260_v23  ;;  %v625_v31 = vmax.f32 %v590_v20, 0.0  ;;  %1585 = vmatpush1.bf16.msra.mxu0 %v3820_v21  ;;  %v3823_v23 = vld [vmem:[#allocation2 + $0x310] ss:$8 sps:$4 sm:$0xff]  }
 0x207   :  { %v626_v30 = vmax.f32 %v592_v25, 0.0  ;;  %1586 = vmatprep.subr.bf16.mxu0 %v3825_v46 }
 0x208   :  { %v627_v33 = vmax.f32 %v594_v27, 0.0 }
 0x209   :  { %v642_v38 = vpack.c.bf16 %v626_v30, %v624_v28 }
 0x20a   :  { %v643_v39 = vpack.c.bf16 %v627_v33, %v625_v31  ;;  %1587 = vmatpush1.bf16.msra.mxu0 %v3823_v23 }
 0x20b   :  { %1588 = vmatprep.subr.bf16.mxu0 %v3828_v47 }
 0x20c   :  { %952 = vmatprep.mubr.bf16.mxu0 %v643_v39 }
 0x20d   :  { %953 = vmatmul.mubr.bf16.gmra.mrb[60].mxu0 %v642_v38 }
 0x20e   :  { %1589 = vmatpush1.bf16.msra.mxu0 %v3826_v48 }
 0x20f   :  { %1590 = vmatprep.subr.bf16.mxu0 %v3831_v49 }
 0x212   :  { %1591 = vmatpush1.bf16.msra.mxu0 %v3829_v51 }
 0x213   :  { %1592 = vmatprep.subr.bf16.mxu0 %v3834_v52 }
 0x216   :  { %1593 = vmatpush1.bf16.msra.mxu0 %v3832_v53 }
 0x217   :  { %1594 = vmatprep.subr.bf16.mxu0 %v3837_v35 }
 0x21a   :  { %1595 = vmatpush1.bf16.msra.mxu0 %v3835_v54 }
 0x21b   :  { %1596 = vmatprep.subr.bf16.mxu0 %v3840_v56 }
 0x21e   :  { %1597 = vmatpush1.bf16.msra.mxu0 %v3838_v37 }
 0x21f   :  { %1598 = vmatprep.subr.bf16.mxu0 %v3843_v57 }
 0x222   :  { %1599 = vmatpush1.bf16.msra.mxu0 %v3841_v58 }
 0x223   :  { %1600 = vmatprep.subr.bf16.mxu0 %v3846_v59 }
 0x226   :  { %1601 = vmatpush1.bf16.msra.mxu0 %v3844_v60 }
 0x227   :  { %1602 = vmatprep.subr.bf16.mxu0 %v3849_v61 }
 0x22a   :  { %1603 = vmatpush1.bf16.msra.mxu0 %v3847_v62 }
 0x22b   :  { %1604 = vmatprep.subr.bf16.mxu0 %v3852_v63 }
 0x22e   :  { %1605 = vmatpush1.bf16.msra.mxu0 %v3850_v1 }
 0x22f   :  { %1606 = vmatprep.subr.bf16.mxu0 %v3855_v2 }
 0x232   :  { %1607 = vmatpush1.bf16.msra.mxu0 %v3853_v3 }
 0x233   :  { %1608 = vmatprep.subr.bf16.mxu0 %v3858_v4 }
 0x236   :  { %1609 = vmatpush1.bf16.msra.mxu0 %v3856_v5 }
 0x237   :  { %1610 = vmatprep.subr.bf16.mxu0 %v3861_v6 }
 0x23a   :  { %1611 = vmatpush1.bf16.msra.mxu0 %v3859_v8 }
 0x2a8   :  { %v884_v12 = vpop.f32.mrb[32].mxu0 }
 0x2a9   :  { %v885_v13 = vadd.f32 %v884_v12, %v4298_v10  ;;  %v886_v14 = vpop.f32.mrb[33].mxu0 }
 0x2aa   :  { %v887_v16 = vadd.f32 %v886_v14, %v4301_v11  ;;  %v888_v17 = vpop.f32.mrb[34].mxu0 }
 0x2ab   :  { %v889_v18 = vadd.f32 %v888_v17, %v4298_v10  ;;  %v890_v19 = vpop.f32.mrb[35].mxu0  ;;  %v963_v24 = vmax.f32 %v885_v13, 0.0 }
 0x2ac   :  { %v891_v20 = vadd.f32 %v890_v19, %v4301_v11  ;;  %v964_v26 = vmax.f32 %v887_v16, 0.0 }
 0x2ad   :  { %v965_v25 = vmax.f32 %v889_v18, 0.0 }
 0x2ae   :  { %v966_v27 = vmax.f32 %v891_v20, 0.0 }
 0x2af   :  { %v995_v28 = vpack.c.bf16 %v965_v25, %v963_v24 }
 0x2b0   :  { %v996_v30 = vpack.c.bf16 %v966_v27, %v964_v26  ;;  %v894_v31 = vpop.f32.mrb[36].mxu0 }
 0x2b1   :  { %v895_v33 = vadd.f32 %v894_v31, %v4298_v10  ;;  %v896_v38 = vpop.f32.mrb[37].mxu0 }
 0x2b2   :  { %v897_v39 = vadd.f32 %v896_v38, %v4301_v11  ;;  %v898_v40 = vpop.f32.mrb[38].mxu0  ;;  %1249 = vmatprep.mubr.bf16.mxu1 %v996_v30 }
 0x2b3   :  { %v899_v41 = vadd.f32 %v898_v40, %v4298_v10  ;;  %v900_v42 = vpop.f32.mrb[39].mxu0  ;;  %1250 = vmatmul.mubr.bf16.vlgmr.msra.gmra.mrb[32].mxu1 %v995_v28  ;;  %v967_v21 = vmax.f32 %v895_v33, 0.0 }
 0x2b4   :  { %v901_v44 = vadd.f32 %v900_v42, %v4301_v11  ;;  %v968_v46 = vmax.f32 %v897_v39, 0.0 }
 0x2b5   :  { %v969_v45 = vmax.f32 %v899_v41, 0.0 }
 0x2b6   :  { %v970_v23 = vmax.f32 %v901_v44, 0.0 }
 0x2b7   :  { %v997_v47 = vpack.c.bf16 %v969_v45, %v967_v21 }
 0x2b8   :  { %v998_v48 = vpack.c.bf16 %v970_v23, %v968_v46  ;;  %v904_v49 = vpop.f32.mrb[40].mxu0 }
 0x2b9   :  { %v905_v51 = vadd.f32 %v904_v49, %v4298_v10  ;;  %v906_v52 = vpop.f32.mrb[41].mxu0 }
 0x2ba   :  { %v907_v53 = vadd.f32 %v906_v52, %v4301_v11  ;;  %v908_v35 = vpop.f32.mrb[42].mxu0  ;;  %1259 = vmatprep.mubr.bf16.mxu1 %v998_v48 }
 0x2bb   :  { %v909_v54 = vadd.f32 %v908_v35, %v4298_v10  ;;  %v910_v56 = vpop.f32.mrb[43].mxu0  ;;  %1260 = vmatmul.mubr.bf16.gmra.mrb[36].mxu1 %v997_v47  ;;  %v971_v57 = vmax.f32 %v905_v51, 0.0 }
 0x2bc   :  { %v911_v37 = vadd.f32 %v910_v56, %v4301_v11  ;;  %v972_v59 = vmax.f32 %v907_v53, 0.0 }
 0x2bd   :  { %v973_v58 = vmax.f32 %v909_v54, 0.0 }
 0x2be   :  { %v974_v60 = vmax.f32 %v911_v37, 0.0 }
 0x2bf   :  { %v999_v61 = vpack.c.bf16 %v973_v58, %v971_v57 }
 0x2c0   :  { %v1000_v62 = vpack.c.bf16 %v974_v60, %v972_v59  ;;  %v914_v63 = vpop.f32.mrb[44].mxu0 }
 0x2c1   :  { %v915_v1 = vadd.f32 %v914_v63, %v4298_v10  ;;  %v916_v2 = vpop.f32.mrb[45].mxu0 }
 0x2c2   :  { %v917_v3 = vadd.f32 %v916_v2, %v4301_v11  ;;  %v918_v4 = vpop.f32.mrb[46].mxu0  ;;  %1269 = vmatprep.mubr.bf16.mxu1 %v1000_v62 }
 0x2c3   :  { %v919_v5 = vadd.f32 %v918_v4, %v4298_v10  ;;  %v920_v6 = vpop.f32.mrb[47].mxu0  ;;  %1270 = vmatmul.mubr.bf16.gmra.mrb[40].mxu1 %v999_v61  ;;  %v975_v9 = vmax.f32 %v915_v1, 0.0 }
 0x2c4   :  { %v921_v8 = vadd.f32 %v920_v6, %v4301_v11  ;;  %v976_v13 = vmax.f32 %v917_v3, 0.0 }
 0x2c5   :  { %v977_v12 = vmax.f32 %v919_v5, 0.0 }
 0x2c6   :  { %v978_v14 = vmax.f32 %v921_v8, 0.0 }
 0x2c7   :  { %v1001_v16 = vpack.c.bf16 %v977_v12, %v975_v9 }
 0x2c8   :  { %v1002_v17 = vpack.c.bf16 %v978_v14, %v976_v13  ;;  %v924_v18 = vpop.f32.mrb[48].mxu0 }
 0x2c9   :  { %v925_v19 = vadd.f32 %v924_v18, %v4298_v10  ;;  %v926_v20 = vpop.f32.mrb[49].mxu0 }
 0x2ca   :  { %v927_v24 = vadd.f32 %v926_v20, %v4301_v11  ;;  %v928_v25 = vpop.f32.mrb[50].mxu0  ;;  %1279 = vmatprep.mubr.bf16.mxu1 %v1002_v17 }
 0x2cb   :  { %v929_v26 = vadd.f32 %v928_v25, %v4298_v10  ;;  %v930_v27 = vpop.f32.mrb[51].mxu0  ;;  %1280 = vmatmul.mubr.bf16.gmra.mrb[44].mxu1 %v1001_v16  ;;  %v979_v30 = vmax.f32 %v925_v19, 0.0 }
 0x2cc   :  { %v931_v28 = vadd.f32 %v930_v27, %v4301_v11  ;;  %v980_v33 = vmax.f32 %v927_v24, 0.0  ;;  %v3862_v27 = vld [vmem:[#allocation2 + $0x3e0] ss:$8 sps:$4 sm:$0xff]  }
 0x2cd   :  { %v981_v31 = vmax.f32 %v929_v26, 0.0  ;;  %v3864_v26 = vld [vmem:[#allocation2 + $0x3e4] ss:$8 sps:$4 sm:$0xff]  }
 0x2ce   :  { %v982_v38 = vmax.f32 %v931_v28, 0.0  ;;  %1612 = vmatprep.subr.bf16.mxu0 %v3864_v26  ;;  %v3867_v28 = vld [vmem:[#allocation2 + $0x3f4] ss:$8 sps:$4 sm:$0xff]  }
 0x2cf   :  { %v1003_v39 = vpack.c.bf16 %v981_v31, %v979_v30  ;;  %1613 = vmatpush1.bf16.msra.mxu0 %v3862_v27  ;;  %v3865_v30 = vld [vmem:[#allocation2 + $0x3f0] ss:$8 sps:$4 sm:$0xff]   ;;  %v3870_v31 = vld [vmem:[#allocation2 + $0x404] ss:$8 sps:$4 sm:$0xff]  }
 0x2d0   :  { %v1004_v40 = vpack.c.bf16 %v982_v38, %v980_v33  ;;  %v934_v41 = vpop.f32.mrb[52].mxu0  ;;  %1614 = vmatprep.subr.bf16.mxu0 %v3867_v28  ;;  %v3873_v33 = vld [vmem:[#allocation2 + $0x414] ss:$8 sps:$4 sm:$0xff]   ;;  %1951 = vmatprep.subr.bf16.mxu1 %v3870_v31  ;;  %v3876_v38 = vld [vmem:[#allocation2 + $0x424] ss:$8 sps:$4 sm:$0xff]  }
 0x2d1   :  { %v935_v42 = vadd.f32 %v934_v41, %v4298_v10  ;;  %v936_v44 = vpop.f32.mrb[53].mxu0  ;;  %v3877_v41 = vld [vmem:[#allocation2 + $0x430] ss:$8 sps:$4 sm:$0xff]  }
 0x2d2   :  { %v937_v21 = vadd.f32 %v936_v44, %v4301_v11  ;;  %v938_v45 = vpop.f32.mrb[54].mxu0  ;;  %1289 = vmatprep.mubr.bf16.mxu1 %v1004_v40  ;;  %v3879_v40 = vld [vmem:[#allocation2 + $0x434] ss:$8 sps:$4 sm:$0xff]   ;;  %v3880_v44 = vld [vmem:[#allocation2 + $0x440] ss:$8 sps:$4 sm:$0xff]  }
 0x2d3   :  { %v939_v46 = vadd.f32 %v938_v45, %v4298_v10  ;;  %v940_v23 = vpop.f32.mrb[55].mxu0  ;;  %1290 = vmatmul.mubr.bf16.gmra.mrb[48].mxu1 %v1003_v39  ;;  %v983_v48 = vmax.f32 %v935_v42, 0.0  ;;  %1615 = vmatpush1.bf16.msra.mxu0 %v3865_v30  ;;  %v3874_v39 = vld [vmem:[#allocation2 + $0x420] ss:$8 sps:$4 sm:$0xff]   ;;  %v3882_v42 = vld [vmem:[#allocation2 + $0x444] ss:$8 sps:$4 sm:$0xff]  }
 0x2d4   :  { %v941_v47 = vadd.f32 %v940_v23, %v4301_v11  ;;  %v984_v51 = vmax.f32 %v937_v21, 0.0  ;;  %v3885_v21 = vld [vmem:[#allocation2 + $0x454] ss:$8 sps:$4 sm:$0xff]   ;;  %v3883_v45 = vld [vmem:[#allocation2 + $0x450] ss:$8 sps:$4 sm:$0xff]  }
 0x2d5   :  { %v985_v49 = vmax.f32 %v939_v46, 0.0  ;;  %v3888_v46 = vld [vmem:[#allocation2 + $0x464] ss:$8 sps:$4 sm:$0xff]   ;;  %v3886_v23 = vld [vmem:[#allocation2 + $0x460] ss:$8 sps:$4 sm:$0xff]  }
 0x2d6   :  { %v986_v52 = vmax.f32 %v941_v47, 0.0  ;;  %v3891_v47 = vld [vmem:[#allocation2 + $0x474] ss:$8 sps:$4 sm:$0xff]  }
 0x2d7   :  { %v1005_v53 = vpack.c.bf16 %v985_v49, %v983_v48  ;;  %v3889_v48 = vld [vmem:[#allocation2 + $0x470] ss:$8 sps:$4 sm:$0xff]   ;;  %v3894_v49 = vld [vmem:[#allocation2 + $0x484] ss:$8 sps:$4 sm:$0xff]  }
 0x2d8   :  { %v1006_v35 = vpack.c.bf16 %v986_v52, %v984_v51  ;;  %v944_v54 = vpop.f32.mrb[56].mxu0  ;;  %v3892_v51 = vld [vmem:[#allocation2 + $0x480] ss:$8 sps:$4 sm:$0xff]   ;;  %v3897_v52 = vld [vmem:[#allocation2 + $0x494] ss:$8 sps:$4 sm:$0xff]  }
 0x2d9   :  { %v945_v56 = vadd.f32 %v944_v54, %v4298_v10  ;;  %v946_v37 = vpop.f32.mrb[57].mxu0  ;;  %v3898_v54 = vld [vmem:[#allocation2 + $0x4a0] ss:$8 sps:$4 sm:$0xff]  }
 0x2da   :  { %v947_v57 = vadd.f32 %v946_v37, %v4301_v11  ;;  %v948_v58 = vpop.f32.mrb[58].mxu0  ;;  %1299 = vmatprep.mubr.bf16.mxu1 %v1006_v35  ;;  %v3900_v35 = vld [vmem:[#allocation2 + $0x4a4] ss:$8 sps:$4 sm:$0xff]   ;;  %v3901_v37 = vld [vmem:[#allocation2 + $0x4b0] ss:$8 sps:$4 sm:$0xff]  }
 0x2db   :  { %v949_v59 = vadd.f32 %v948_v58, %v4298_v10  ;;  %v950_v60 = vpop.f32.mrb[59].mxu0  ;;  %1300 = vmatmul.mubr.bf16.gmra.mrb[52].mxu1 %v1005_v53  ;;  %v987_v62 = vmax.f32 %v945_v56, 0.0  ;;  %v3895_v53 = vld [vmem:[#allocation2 + $0x490] ss:$8 sps:$4 sm:$0xff]   ;;  %v3903_v56 = vld [vmem:[#allocation2 + $0x4b4] ss:$8 sps:$4 sm:$0xff]  }
 0x2dc   :  { %v951_v61 = vadd.f32 %v950_v60, %v4301_v11  ;;  %v988_v1 = vmax.f32 %v947_v57, 0.0  ;;  %v3906_v57 = vld [vmem:[#allocation2 + $0x4c4] ss:$8 sps:$4 sm:$0xff]   ;;  %v3904_v58 = vld [vmem:[#allocation2 + $0x4c0] ss:$8 sps:$4 sm:$0xff]  }
 0x2dd   :  { %v989_v63 = vmax.f32 %v949_v59, 0.0  ;;  %v3909_v59 = vld [vmem:[#allocation2 + $0x4d4] ss:$8 sps:$4 sm:$0xff]   ;;  %v3907_v60 = vld [vmem:[#allocation2 + $0x4d0] ss:$8 sps:$4 sm:$0xff]  }
 0x2de   :  { %v990_v2 = vmax.f32 %v951_v61, 0.0  ;;  %v3333_v61 = vld [vmem:[%s4722_s4 + $0x4] sm:$0x3] }
 0x2df   :  { %v1007_v3 = vpack.c.bf16 %v989_v63, %v987_v62  ;;  %v4339_v62 = vrot.slane %v3333_v61, %v4208_v32  ;;  %v4342_v63 = vrot.slane %v3333_v61, %v4213_v34 }
 0x2e0   :  { %v1008_v4 = vpack.c.bf16 %v990_v2, %v988_v1  ;;  %v954_v5 = vpop.f32.mrb[60].mxu0 }
 0x2e1   :  { %v955_v6 = vadd.f32 %v954_v5, %v4298_v10  ;;  %v956_v8 = vpop.f32.mrb[61].mxu0 }
 0x2e2   :  { %v957_v9 = vadd.f32 %v956_v8, %v4301_v11  ;;  %v958_v12 = vpop.f32.mrb[62].mxu0  ;;  %1309 = vmatprep.mubr.bf16.mxu1 %v1008_v4 }
 0x2e3   :  { %v959_v13 = vadd.f32 %v958_v12, %v4298_v10  ;;  %v960_v14 = vpop.f32.mrb[63].mxu0  ;;  %1310 = vmatmul.mubr.bf16.gmra.mrb[56].mxu1 %v1007_v3  ;;  %v991_v17 = vmax.f32 %v955_v6, 0.0  ;;  %v3868_v10 = vld [vmem:[#allocation2 + $0x400] ss:$8 sps:$4 sm:$0xff]  }
 0x2e4   :  { %v961_v16 = vadd.f32 %v960_v14, %v4301_v11  ;;  %v992_v19 = vmax.f32 %v957_v9, 0.0  ;;  %1952 = vmatpush1.bf16.msra.mxu1 %v3868_v10  ;;  %v3871_v11 = vld [vmem:[#allocation2 + $0x410] ss:$8 sps:$4 sm:$0xff]  }
 0x2e5   :  { %v993_v18 = vmax.f32 %v959_v13, 0.0  ;;  %1953 = vmatprep.subr.bf16.mxu1 %v3873_v33 }
 0x2e6   :  { %v994_v20 = vmax.f32 %v961_v16, 0.0 }
 0x2e7   :  { %v1009_v24 = vpack.c.bf16 %v993_v18, %v991_v17 }
 0x2e8   :  { %v1010_v25 = vpack.c.bf16 %v994_v20, %v992_v19  ;;  %1954 = vmatpush1.bf16.msra.mxu1 %v3871_v11 }
 0x2e9   :  { %1955 = vmatprep.subr.bf16.mxu1 %v3876_v38 }
 0x2ea   :  { %1319 = vmatprep.mubr.bf16.mxu1 %v1010_v25 }
 0x2eb   :  { %1320 = vmatmul.mubr.bf16.gmra.mrb[60].mxu1 %v1009_v24 }
 0x2ec   :  { %1956 = vmatpush1.bf16.msra.mxu1 %v3874_v39 }
 0x2ed   :  { %1957 = vmatprep.subr.bf16.mxu1 %v3879_v40 }
 0x2f0   :  { %1958 = vmatpush1.bf16.msra.mxu1 %v3877_v41 }
 0x2f1   :  { %1959 = vmatprep.subr.bf16.mxu1 %v3882_v42 }
 0x2f4   :  { %1960 = vmatpush1.bf16.msra.mxu1 %v3880_v44 }
 0x2f5   :  { %1961 = vmatprep.subr.bf16.mxu1 %v3885_v21 }
 0x2f8   :  { %1962 = vmatpush1.bf16.msra.mxu1 %v3883_v45 }
 0x2f9   :  { %1963 = vmatprep.subr.bf16.mxu1 %v3888_v46 }
 0x2fc   :  { %1964 = vmatpush1.bf16.msra.mxu1 %v3886_v23 }
 0x2fd   :  { %1965 = vmatprep.subr.bf16.mxu1 %v3891_v47 }
 0x300   :  { %1966 = vmatpush1.bf16.msra.mxu1 %v3889_v48 }
 0x301   :  { %1967 = vmatprep.subr.bf16.mxu1 %v3894_v49 }
 0x304   :  { %1968 = vmatpush1.bf16.msra.mxu1 %v3892_v51 }
 0x305   :  { %1969 = vmatprep.subr.bf16.mxu1 %v3897_v52 }
 0x308   :  { %1970 = vmatpush1.bf16.msra.mxu1 %v3895_v53 }
 0x309   :  { %1971 = vmatprep.subr.bf16.mxu1 %v3900_v35 }
 0x30c   :  { %1972 = vmatpush1.bf16.msra.mxu1 %v3898_v54 }
 0x30d   :  { %1973 = vmatprep.subr.bf16.mxu1 %v3903_v56 }
 0x310   :  { %1974 = vmatpush1.bf16.msra.mxu1 %v3901_v37 }
 0x311   :  { %1975 = vmatprep.subr.bf16.mxu1 %v3906_v57 }
 0x314   :  { %1976 = vmatpush1.bf16.msra.mxu1 %v3904_v58 }
 0x315   :  { %1977 = vmatprep.subr.bf16.mxu1 %v3909_v59 }
 0x318   :  { %1978 = vmatpush1.bf16.msra.mxu1 %v3907_v60 }
 0x386   :  { %v1251_v1 = vpop.f32.mrb[32].mxu1 }
 0x387   :  { %v1252_v2 = vadd.f32 %v1251_v1, %v4339_v62  ;;  %v1253_v3 = vpop.f32.mrb[33].mxu1 }
 0x388   :  { %v1254_v4 = vadd.f32 %v1253_v3, %v4342_v63  ;;  %v1255_v5 = vpop.f32.mrb[34].mxu1 }
 0x389   :  { %v1256_v6 = vadd.f32 %v1255_v5, %v4339_v62  ;;  %v1257_v8 = vpop.f32.mrb[35].mxu1  ;;  %v1330_v12 = vmax.f32 %v1252_v2, 0.0 }
 0x38a   :  { %v1258_v9 = vadd.f32 %v1257_v8, %v4342_v63  ;;  %v1331_v14 = vmax.f32 %v1254_v4, 0.0 }
 0x38b   :  { %v1332_v13 = vmax.f32 %v1256_v6, 0.0 }
 0x38c   :  { %v1333_v16 = vmax.f32 %v1258_v9, 0.0 }
 0x38d   :  { %v1362_v17 = vpack.c.bf16 %v1332_v13, %v1330_v12 }
 0x38e   :  { %v1363_v18 = vpack.c.bf16 %v1333_v16, %v1331_v14  ;;  %v1261_v19 = vpop.f32.mrb[36].mxu1 }
 0x38f   :  { %v1262_v20 = vadd.f32 %v1261_v19, %v4339_v62  ;;  %v1263_v24 = vpop.f32.mrb[37].mxu1 }
 0x390   :  { %v1264_v25 = vadd.f32 %v1263_v24, %v4342_v63  ;;  %v1265_v26 = vpop.f32.mrb[38].mxu1  ;;  %1616 = vmatprep.mubr.bf16.mxu0 %v1363_v18 }
 0x391   :  { %v1266_v27 = vadd.f32 %v1265_v26, %v4339_v62  ;;  %v1267_v28 = vpop.f32.mrb[39].mxu1  ;;  %1617 = vmatmul.mubr.bf16.vlgmr.msra.gmra.mrb[64].mxu0 %v1362_v17  ;;  %v1334_v10 = vmax.f32 %v1262_v20, 0.0 }
 0x392   :  { %v1268_v30 = vadd.f32 %v1267_v28, %v4342_v63  ;;  %v1335_v33 = vmax.f32 %v1264_v25, 0.0 }
 0x393   :  { %v1336_v31 = vmax.f32 %v1266_v27, 0.0 }
 0x394   :  { %v1337_v11 = vmax.f32 %v1268_v30, 0.0 }
 0x395   :  { %v1364_v38 = vpack.c.bf16 %v1336_v31, %v1334_v10 }
 0x396   :  { %v1365_v39 = vpack.c.bf16 %v1337_v11, %v1335_v33  ;;  %v1271_v40 = vpop.f32.mrb[40].mxu1 }
 0x397   :  { %v1272_v41 = vadd.f32 %v1271_v40, %v4339_v62  ;;  %v1273_v42 = vpop.f32.mrb[41].mxu1 }
 0x398   :  { %v1274_v44 = vadd.f32 %v1273_v42, %v4342_v63  ;;  %v1275_v21 = vpop.f32.mrb[42].mxu1  ;;  %1626 = vmatprep.mubr.bf16.mxu0 %v1365_v39 }
 0x399   :  { %v1276_v45 = vadd.f32 %v1275_v21, %v4339_v62  ;;  %v1277_v46 = vpop.f32.mrb[43].mxu1  ;;  %1627 = vmatmul.mubr.bf16.gmra.mrb[68].mxu0 %v1364_v38  ;;  %v1338_v47 = vmax.f32 %v1272_v41, 0.0 }
 0x39a   :  { %v1278_v23 = vadd.f32 %v1277_v46, %v4342_v63  ;;  %v1339_v49 = vmax.f32 %v1274_v44, 0.0 }
 0x39b   :  { %v1340_v48 = vmax.f32 %v1276_v45, 0.0 }
 0x39c   :  { %v1341_v51 = vmax.f32 %v1278_v23, 0.0 }
 0x39d   :  { %v1366_v52 = vpack.c.bf16 %v1340_v48, %v1338_v47 }
 0x39e   :  { %v1367_v53 = vpack.c.bf16 %v1341_v51, %v1339_v49  ;;  %v1281_v35 = vpop.f32.mrb[44].mxu1 }
 0x39f   :  { %v1282_v54 = vadd.f32 %v1281_v35, %v4339_v62  ;;  %v1283_v56 = vpop.f32.mrb[45].mxu1 }
 0x3a0   :  { %v1284_v37 = vadd.f32 %v1283_v56, %v4342_v63  ;;  %v1285_v57 = vpop.f32.mrb[46].mxu1  ;;  %1636 = vmatprep.mubr.bf16.mxu0 %v1367_v53 }
 0x3a1   :  { %v1286_v58 = vadd.f32 %v1285_v57, %v4339_v62  ;;  %v1287_v59 = vpop.f32.mrb[47].mxu1  ;;  %1637 = vmatmul.mubr.bf16.gmra.mrb[72].mxu0 %v1366_v52  ;;  %v1342_v61 = vmax.f32 %v1282_v54, 0.0 }
 0x3a2   :  { %v1288_v60 = vadd.f32 %v1287_v59, %v4342_v63  ;;  %v1343_v2 = vmax.f32 %v1284_v37, 0.0 }
 0x3a3   :  { %v1344_v1 = vmax.f32 %v1286_v58, 0.0 }
 0x3a4   :  { %v1345_v3 = vmax.f32 %v1288_v60, 0.0 }
 0x3a5   :  { %v1368_v4 = vpack.c.bf16 %v1344_v1, %v1342_v61 }
 0x3a6   :  { %v1369_v5 = vpack.c.bf16 %v1345_v3, %v1343_v2  ;;  %v1291_v6 = vpop.f32.mrb[48].mxu1 }
 0x3a7   :  { %v1292_v8 = vadd.f32 %v1291_v6, %v4339_v62  ;;  %v1293_v9 = vpop.f32.mrb[49].mxu1 }
 0x3a8   :  { %v1294_v12 = vadd.f32 %v1293_v9, %v4342_v63  ;;  %v1295_v13 = vpop.f32.mrb[50].mxu1  ;;  %1646 = vmatprep.mubr.bf16.mxu0 %v1369_v5 }
 0x3a9   :  { %v1296_v14 = vadd.f32 %v1295_v13, %v4339_v62  ;;  %v1297_v16 = vpop.f32.mrb[51].mxu1  ;;  %1647 = vmatmul.mubr.bf16.gmra.mrb[76].mxu0 %v1368_v4  ;;  %v1346_v18 = vmax.f32 %v1292_v8, 0.0 }
 0x3aa   :  { %v1298_v17 = vadd.f32 %v1297_v16, %v4342_v63  ;;  %v1347_v20 = vmax.f32 %v1294_v12, 0.0  ;;  %v3910_v16 = vld [vmem:[#allocation2 + $0x4e0] ss:$8 sps:$4 sm:$0xff]  }
 0x3ab   :  { %v1348_v19 = vmax.f32 %v1296_v14, 0.0  ;;  %v3912_v14 = vld [vmem:[#allocation2 + $0x4e4] ss:$8 sps:$4 sm:$0xff]  }
 0x3ac   :  { %v1349_v24 = vmax.f32 %v1298_v17, 0.0  ;;  %1979 = vmatprep.subr.bf16.mxu1 %v3912_v14  ;;  %v3915_v17 = vld [vmem:[#allocation2 + $0x4f4] ss:$8 sps:$4 sm:$0xff]   ;;  %v3930_v14 = vld [vmem:[#allocation2 + $0x540] ss:$8 sps:$4 sm:$0xff]  }
 0x3ad   :  { %v1370_v25 = vpack.c.bf16 %v1348_v19, %v1346_v18  ;;  %1980 = vmatpush1.bf16.msra.mxu1 %v3910_v16  ;;  %v3913_v18 = vld [vmem:[#allocation2 + $0x4f0] ss:$8 sps:$4 sm:$0xff]   ;;  %v3366_v19 = vld [vmem:[%s4722_s4 + $0x6] sm:$0x3] }
 0x3ae   :  { %v1371_v26 = vpack.c.bf16 %v1349_v24, %v1347_v20  ;;  %v1301_v27 = vpop.f32.mrb[52].mxu1  ;;  %1981 = vmatprep.subr.bf16.mxu1 %v3915_v17  ;;  %v4384_v20 = vrot.slane %v3366_v19, %v4208_v32  ;;  %v4387_v24 = vrot.slane %v3366_v19, %v4213_v34 }
 0x3af   :  { %v1302_v28 = vadd.f32 %v1301_v27, %v4339_v62  ;;  %v1303_v30 = vpop.f32.mrb[53].mxu1 }
 0x3b0   :  { %v1304_v10 = vadd.f32 %v1303_v30, %v4342_v63  ;;  %v1305_v31 = vpop.f32.mrb[54].mxu1  ;;  %1656 = vmatprep.mubr.bf16.mxu0 %v1371_v26 }
 0x3b1   :  { %v1306_v33 = vadd.f32 %v1305_v31, %v4339_v62  ;;  %v1307_v11 = vpop.f32.mrb[55].mxu1  ;;  %1657 = vmatmul.mubr.bf16.gmra.mrb[80].mxu0 %v1370_v25  ;;  %v1350_v39 = vmax.f32 %v1302_v28, 0.0  ;;  %1982 = vmatpush1.bf16.msra.mxu1 %v3913_v18  ;;  %v3935_v18 = vld [vmem:[#allocation2 + $0x554] ss:$8 sps:$4 sm:$0xff]  }
 0x3b2   :  { %v1308_v38 = vadd.f32 %v1307_v11, %v4342_v63  ;;  %v1351_v41 = vmax.f32 %v1304_v10, 0.0  ;;  %v3920_v11 = vld [vmem:[#allocation2 + $0x504] ss:$8 sps:$4 sm:$0xff]  }
 0x3b3   :  { %v1352_v40 = vmax.f32 %v1306_v33, 0.0  ;;  %v3918_v33 = vld [vmem:[#allocation2 + $0x500] ss:$8 sps:$4 sm:$0xff]   ;;  %2475 = vmatprep.subr.bf16.mxu0 %v3920_v11 }
 0x3b4   :  { %v1353_v42 = vmax.f32 %v1308_v38, 0.0  ;;  %2476 = vmatpush1.bf16.msra.mxu0 %v3918_v33 }
 0x3b5   :  { %v1372_v44 = vpack.c.bf16 %v1352_v40, %v1350_v39  ;;  %v3923_v39 = vld [vmem:[#allocation2 + $0x514] ss:$8 sps:$4 sm:$0xff]  }
 0x3b6   :  { %v1373_v21 = vpack.c.bf16 %v1353_v42, %v1351_v41  ;;  %v1311_v45 = vpop.f32.mrb[56].mxu1  ;;  %2477 = vmatprep.subr.bf16.mxu0 %v3923_v39 }
 0x3b7   :  { %v1312_v46 = vadd.f32 %v1311_v45, %v4339_v62  ;;  %v1313_v23 = vpop.f32.mrb[57].mxu1  ;;  %v3921_v45 = vld [vmem:[#allocation2 + $0x510] ss:$8 sps:$4 sm:$0xff]  }
 0x3b8   :  { %v1314_v47 = vadd.f32 %v1313_v23, %v4342_v63  ;;  %v1315_v48 = vpop.f32.mrb[58].mxu1  ;;  %1666 = vmatprep.mubr.bf16.mxu0 %v1373_v21  ;;  %v3926_v23 = vld [vmem:[#allocation2 + $0x524] ss:$8 sps:$4 sm:$0xff]   ;;  %2478 = vmatpush1.bf16.msra.mxu0 %v3921_v45 }
 0x3b9   :  { %v1316_v49 = vadd.f32 %v1315_v48, %v4339_v62  ;;  %v1317_v51 = vpop.f32.mrb[59].mxu1  ;;  %1667 = vmatmul.mubr.bf16.gmra.mrb[84].mxu0 %v1372_v44  ;;  %v1354_v53 = vmax.f32 %v1312_v46, 0.0  ;;  %2479 = vmatprep.subr.bf16.mxu0 %v3926_v23 }
 0x3ba   :  { %v1318_v52 = vadd.f32 %v1317_v51, %v4342_v63  ;;  %v1355_v54 = vmax.f32 %v1314_v47, 0.0 }
 0x3bb   :  { %v1356_v35 = vmax.f32 %v1316_v49, 0.0 }
 0x3bc   :  { %v1357_v56 = vmax.f32 %v1318_v52, 0.0 }
 0x3bd   :  { %v1374_v37 = vpack.c.bf16 %v1356_v35, %v1354_v53 }
 0x3be   :  { %v1375_v57 = vpack.c.bf16 %v1357_v56, %v1355_v54  ;;  %v1321_v58 = vpop.f32.mrb[60].mxu1  ;;  %v3924_v54 = vld [vmem:[#allocation2 + $0x520] ss:$8 sps:$4 sm:$0xff]  }
 0x3bf   :  { %v1322_v59 = vadd.f32 %v1321_v58, %v4339_v62  ;;  %v1323_v60 = vpop.f32.mrb[61].mxu1  ;;  %2480 = vmatpush1.bf16.msra.mxu0 %v3924_v54 }
 0x3c0   :  { %v1324_v61 = vadd.f32 %v1323_v60, %v4342_v63  ;;  %v1325_v1 = vpop.f32.mrb[62].mxu1  ;;  %1676 = vmatprep.mubr.bf16.mxu0 %v1375_v57  ;;  %v3929_v57 = vld [vmem:[#allocation2 + $0x534] ss:$8 sps:$4 sm:$0xff]  }
 0x3c1   :  { %v1326_v2 = vadd.f32 %v1325_v1, %v4339_v62  ;;  %v1327_v3 = vpop.f32.mrb[63].mxu1  ;;  %1677 = vmatmul.mubr.bf16.gmra.mrb[88].mxu0 %v1374_v37  ;;  %v1358_v5 = vmax.f32 %v1322_v59, 0.0  ;;  %v2064_v62 = vld [vmem:[%s4723_s5] sm:$0xff]  ;;  %2481 = vmatprep.subr.bf16.mxu0 %v3929_v57 }
 0x3c2   :  { %v1328_v4 = vadd.f32 %v1327_v3, %v4342_v63  ;;  %v1359_v8 = vmax.f32 %v1324_v61, 0.0  ;;  %v3433_v63 = vcombine.high %v2064_v62, %v2064_v62  ;;  %v3432_v42 = vcombine.low %v2064_v62, %v2064_v62  ;;  %v3942_v57 = vld [vmem:[#allocation2 + $0x580] ss:$8 sps:$4 sm:$0xff]  }
 0x3c3   :  { %v1360_v6 = vmax.f32 %v1326_v2, 0.0  ;;  %v3927_v2 = vld [vmem:[#allocation2 + $0x530] ss:$8 sps:$4 sm:$0xff]  }
 0x3c4   :  { %v1361_v9 = vmax.f32 %v1328_v4, 0.0  ;;  %3434 = vmatprep.subr.msk.bf16.mxu1 %vm111_vm0, %v3433_v63  ;;  %v2071_v52 = vsel %vm111_vm0, %v3432_v42, 0  ;;  %v3932_v4 = vld [vmem:[#allocation2 + $0x544] ss:$8 sps:$4 sm:$0xff]   ;;  %2482 = vmatpush1.bf16.msra.mxu0 %v3927_v2 }
 0x3c5   :  { %v1376_v12 = vpack.c.bf16 %v1360_v6, %v1358_v5  ;;  %2483 = vmatprep.subr.bf16.mxu0 %v3932_v4 }
 0x3c6   :  { %v1377_v13 = vpack.c.bf16 %v1361_v9, %v1359_v8 }
 0x3c8   :  { %1686 = vmatprep.mubr.bf16.mxu0 %v1377_v13  ;;  %2484 = vmatpush1.bf16.msra.mxu0 %v3930_v14 }
 0x3c9   :  { %1687 = vmatmul.mubr.bf16.gmra.mrb[92].mxu0 %v1376_v12  ;;  %2485 = vmatprep.subr.bf16.mxu0 %v3935_v18  ;;  %v3948_v18 = vld [vmem:[#allocation2 + $0x5a0] ss:$8 sps:$4 sm:$0xff]  }
 0x464   :  { %v1618_v25 = vpop.f32.mrb[64].mxu0 }
 0x465   :  { %v1619_v26 = vadd.f32 %v1618_v25, %v4384_v20  ;;  %v1620_v27 = vpop.f32.mrb[65].mxu0 }
 0x466   :  { %v1621_v28 = vadd.f32 %v1620_v27, %v4387_v24  ;;  %v1622_v30 = vpop.f32.mrb[66].mxu0  ;;  %v3933_v27 = vld [vmem:[#allocation2 + $0x550] ss:$8 sps:$4 sm:$0xff]  }
 0x467   :  { %v1623_v10 = vadd.f32 %v1622_v30, %v4384_v20  ;;  %v1624_v31 = vpop.f32.mrb[67].mxu0  ;;  %v1697_v40 = vmax.f32 %v1619_v26, 0.0  ;;  %v3938_v30 = vld [vmem:[#allocation2 + $0x564] ss:$8 sps:$4 sm:$0xff]   ;;  %2486 = vmatpush1.bf16.msra.mxu0 %v3933_v27 }
 0x468   :  { %v1625_v38 = vadd.f32 %v1624_v31, %v4387_v24  ;;  %v1698_v44 = vmax.f32 %v1621_v28, 0.0  ;;  %2487 = vmatprep.subr.bf16.mxu0 %v3938_v30 }
 0x469   :  { %v1699_v41 = vmax.f32 %v1623_v10, 0.0 }
 0x46a   :  { %v1700_v21 = vmax.f32 %v1625_v38, 0.0 }
 0x46b   :  { %v1729_v46 = vpack.c.bf16 %v1699_v41, %v1697_v40  ;;  %v3936_v40 = vld [vmem:[#allocation2 + $0x560] ss:$8 sps:$4 sm:$0xff]  }
 0x46c   :  { %v1730_v47 = vpack.c.bf16 %v1700_v21, %v1698_v44  ;;  %v1628_v48 = vpop.f32.mrb[68].mxu0  ;;  %v3941_v44 = vld [vmem:[#allocation2 + $0x574] ss:$8 sps:$4 sm:$0xff]   ;;  %2488 = vmatpush1.bf16.msra.mxu0 %v3936_v40 }
 0x46d   :  { %v1629_v49 = vadd.f32 %v1628_v48, %v4384_v20  ;;  %v1630_v51 = vpop.f32.mrb[69].mxu0  ;;  %v3939_v48 = vld [vmem:[#allocation2 + $0x570] ss:$8 sps:$4 sm:$0xff]   ;;  %2489 = vmatprep.subr.bf16.mxu0 %v3941_v44  ;;  %v3954_v44 = vld [vmem:[#allocation2 + $0x5c0] ss:$8 sps:$4 sm:$0xff]  }
 0x46e   :  { %v1631_v53 = vadd.f32 %v1630_v51, %v4387_v24  ;;  %v1632_v35 = vpop.f32.mrb[70].mxu0  ;;  %1983 = vmatprep.mubr.bf16.mxu1 %v1730_v47  ;;  %v3944_v51 = vld [vmem:[#allocation2 + $0x584] ss:$8 sps:$4 sm:$0xff]  }
 0x46f   :  { %v1633_v56 = vadd.f32 %v1632_v35, %v4384_v20  ;;  %v1634_v37 = vpop.f32.mrb[71].mxu0  ;;  %1984 = vmatmul.mubr.bf16.vlgmr.msra.gmra.mrb[64].mxu1 %v1729_v46  ;;  %v1701_v59 = vmax.f32 %v1629_v49, 0.0 }
 0x470   :  { %v1635_v58 = vadd.f32 %v1634_v37, %v4387_v24  ;;  %2077 = vmatpush1.bf16.msra.mxu1 %v2071_v52  ;;  %v1702_v61 = vmax.f32 %v1631_v53, 0.0  ;;  %2490 = vmatpush1.bf16.msra.mxu0 %v3939_v48 }
 0x471   :  { %v1703_v60 = vmax.f32 %v1633_v56, 0.0  ;;  %2491 = vmatprep.subr.bf16.mxu0 %v3944_v51 }
 0x472   :  { %v1704_v1 = vmax.f32 %v1635_v58, 0.0 }
 0x473   :  { %v1731_v3 = vpack.c.bf16 %v1703_v60, %v1701_v59  ;;  %v3947_v60 = vld [vmem:[#allocation2 + $0x594] ss:$8 sps:$4 sm:$0xff]  }
 0x474   :  { %v1732_v5 = vpack.c.bf16 %v1704_v1, %v1702_v61  ;;  %v1638_v6 = vpop.f32.mrb[72].mxu0  ;;  %2492 = vmatpush1.bf16.msra.mxu0 %v3942_v57 }
 0x475   :  { %v1639_v8 = vadd.f32 %v1638_v6, %v4384_v20  ;;  %v1640_v9 = vpop.f32.mrb[73].mxu0  ;;  %2493 = vmatprep.subr.bf16.mxu0 %v3947_v60 }
 0x476   :  { %v1641_v12 = vadd.f32 %v1640_v9, %v4387_v24  ;;  %v1642_v13 = vpop.f32.mrb[74].mxu0  ;;  %1993 = vmatprep.mubr.bf16.mxu1 %v1732_v5  ;;  %v3945_v5 = vld [vmem:[#allocation2 + $0x590] ss:$8 sps:$4 sm:$0xff]  }
 0x477   :  { %v1643_v16 = vadd.f32 %v1642_v13, %v4384_v20  ;;  %v1644_v17 = vpop.f32.mrb[75].mxu0  ;;  %1994 = vmatmul.mubr.bf16.gmra.mrb[68].mxu1 %v1731_v3  ;;  %v1705_v63 = vmax.f32 %v1639_v8, 0.0  ;;  %v3950_v8 = vld [vmem:[#allocation2 + $0x5a4] ss:$8 sps:$4 sm:$0xff]  }
 0x478   :  { %v1645_v62 = vadd.f32 %v1644_v17, %v4387_v24  ;;  %v1706_v25 = vmax.f32 %v1641_v12, 0.0  ;;  %2494 = vmatpush1.bf16.msra.mxu0 %v3945_v5 }
 0x479   :  { %v1707_v19 = vmax.f32 %v1643_v16, 0.0  ;;  %2495 = vmatprep.subr.bf16.mxu0 %v3950_v8 }
 0x47a   :  { %v1708_v26 = vmax.f32 %v1645_v62, 0.0 }
 0x47b   :  { %v1733_v28 = vpack.c.bf16 %v1707_v19, %v1705_v63  ;;  %v3953_v19 = vld [vmem:[#allocation2 + $0x5b4] ss:$8 sps:$4 sm:$0xff]  }
 0x47c   :  { %v1734_v10 = vpack.c.bf16 %v1708_v26, %v1706_v25  ;;  %v1648_v31 = vpop.f32.mrb[76].mxu0  ;;  %2496 = vmatpush1.bf16.msra.mxu0 %v3948_v18 }
 0x47d   :  { %v1649_v33 = vadd.f32 %v1648_v31, %v4384_v20  ;;  %v1650_v11 = vpop.f32.mrb[77].mxu0  ;;  %2497 = vmatprep.subr.bf16.mxu0 %v3953_v19 }
 0x47e   :  { %v1651_v38 = vadd.f32 %v1650_v11, %v4387_v24  ;;  %v1652_v39 = vpop.f32.mrb[78].mxu0  ;;  %2003 = vmatprep.mubr.bf16.mxu1 %v1734_v10  ;;  %v3951_v10 = vld [vmem:[#allocation2 + $0x5b0] ss:$8 sps:$4 sm:$0xff]  }
 0x47f   :  { %v1653_v41 = vadd.f32 %v1652_v39, %v4384_v20  ;;  %v1654_v42 = vpop.f32.mrb[79].mxu0  ;;  %2004 = vmatmul.mubr.bf16.gmra.mrb[72].mxu1 %v1733_v28  ;;  %v1709_v45 = vmax.f32 %v1649_v33, 0.0  ;;  %v3956_v33 = vld [vmem:[#allocation2 + $0x5c4] ss:$8 sps:$4 sm:$0xff]  }
 0x480   :  { %v1655_v21 = vadd.f32 %v1654_v42, %v4387_v24  ;;  %v1710_v23 = vmax.f32 %v1651_v38, 0.0  ;;  %2498 = vmatpush1.bf16.msra.mxu0 %v3951_v10 }
 0x481   :  { %v1711_v46 = vmax.f32 %v1653_v41, 0.0  ;;  %2499 = vmatprep.subr.bf16.mxu0 %v3956_v33 }
 0x482   :  { %v1712_v47 = vmax.f32 %v1655_v21, 0.0 }
 0x483   :  { %v1735_v49 = vpack.c.bf16 %v1711_v46, %v1709_v45  ;;  %v3959_v46 = vld [vmem:[#allocation2 + $0x5d4] ss:$8 sps:$4 sm:$0xff]  }
 0x484   :  { %v1736_v52 = vpack.c.bf16 %v1712_v47, %v1710_v23  ;;  %v1658_v53 = vpop.f32.mrb[80].mxu0  ;;  %2500 = vmatpush1.bf16.msra.mxu0 %v3954_v44 }
 0x485   :  { %v1659_v35 = vadd.f32 %v1658_v53, %v4384_v20  ;;  %v1660_v54 = vpop.f32.mrb[81].mxu0  ;;  %2501 = vmatprep.subr.bf16.mxu0 %v3959_v46 }
 0x486   :  { %v1661_v56 = vadd.f32 %v1660_v54, %v4387_v24  ;;  %v1662_v37 = vpop.f32.mrb[82].mxu0  ;;  %2013 = vmatprep.mubr.bf16.mxu1 %v1736_v52  ;;  %v3957_v52 = vld [vmem:[#allocation2 + $0x5d0] ss:$8 sps:$4 sm:$0xff]  }
 0x487   :  { %v1663_v58 = vadd.f32 %v1662_v37, %v4384_v20  ;;  %v1664_v59 = vpop.f32.mrb[83].mxu0  ;;  %2014 = vmatmul.mubr.bf16.gmra.mrb[76].mxu1 %v1735_v49  ;;  %v1713_v1 = vmax.f32 %v1659_v35, 0.0 }
 0x488   :  { %v1665_v61 = vadd.f32 %v1664_v59, %v4387_v24  ;;  %v1714_v3 = vmax.f32 %v1661_v56, 0.0  ;;  %2502 = vmatpush1.bf16.msra.mxu0 %v3957_v52 }
 0x489   :  { %v1715_v2 = vmax.f32 %v1663_v58, 0.0 }
 0x48a   :  { %v1716_v4 = vmax.f32 %v1665_v61, 0.0 }
 0x48b   :  { %v1737_v6 = vpack.c.bf16 %v1715_v2, %v1713_v1 }
 0x48c   :  { %v1738_v9 = vpack.c.bf16 %v1716_v4, %v1714_v3  ;;  %v1668_v12 = vpop.f32.mrb[84].mxu0 }
 0x48d   :  { %v1669_v13 = vadd.f32 %v1668_v12, %v4384_v20  ;;  %v1670_v14 = vpop.f32.mrb[85].mxu0 }
 0x48e   :  { %v1671_v16 = vadd.f32 %v1670_v14, %v4387_v24  ;;  %v1672_v17 = vpop.f32.mrb[86].mxu0  ;;  %2023 = vmatprep.mubr.bf16.mxu1 %v1738_v9 }
 0x48f   :  { %v1673_v62 = vadd.f32 %v1672_v17, %v4384_v20  ;;  %v1674_v63 = vpop.f32.mrb[87].mxu0  ;;  %2024 = vmatmul.mubr.bf16.gmra.mrb[80].mxu1 %v1737_v6  ;;  %v1717_v26 = vmax.f32 %v1669_v13, 0.0 }
 0x490   :  { %v1675_v25 = vadd.f32 %v1674_v63, %v4387_v24  ;;  %v1718_v28 = vmax.f32 %v1671_v16, 0.0 }
 0x491   :  { %v1719_v27 = vmax.f32 %v1673_v62, 0.0 }
 0x492   :  { %v1720_v30 = vmax.f32 %v1675_v25, 0.0 }
 0x493   :  { %v1739_v31 = vpack.c.bf16 %v1719_v27, %v1717_v26  ;;  %v3966_v26 = vld [vmem:[#allocation2 + $0x600] ss:$8 sps:$4 sm:$0xff]  }
 0x494   :  { %v1740_v11 = vpack.c.bf16 %v1720_v30, %v1718_v28  ;;  %v1678_v38 = vpop.f32.mrb[88].mxu0  ;;  %v3971_v30 = vld [vmem:[#allocation2 + $0x614] ss:$8 sps:$4 sm:$0xff]  }
 0x495   :  { %v1679_v39 = vadd.f32 %v1678_v38, %v4384_v20  ;;  %v1680_v40 = vpop.f32.mrb[89].mxu0 }
 0x496   :  { %v1681_v41 = vadd.f32 %v1680_v40, %v4387_v24  ;;  %v1682_v42 = vpop.f32.mrb[90].mxu0  ;;  %2033 = vmatprep.mubr.bf16.mxu1 %v1740_v11 }
 0x497   :  { %v1683_v21 = vadd.f32 %v1682_v42, %v4384_v20  ;;  %v1684_v45 = vpop.f32.mrb[91].mxu0  ;;  %2034 = vmatmul.mubr.bf16.gmra.mrb[84].mxu1 %v1739_v31  ;;  %v1721_v47 = vmax.f32 %v1679_v39, 0.0  ;;  %v3969_v39 = vld [vmem:[#allocation2 + $0x610] ss:$8 sps:$4 sm:$0xff]   ;;  %v3974_v42 = vld [vmem:[#allocation2 + $0x624] ss:$8 sps:$4 sm:$0xff]  }
 0x498   :  { %v1685_v23 = vadd.f32 %v1684_v45, %v4387_v24  ;;  %v1722_v49 = vmax.f32 %v1681_v41, 0.0 }
 0x499   :  { %v1723_v48 = vmax.f32 %v1683_v21, 0.0 }
 0x49a   :  { %v1724_v51 = vmax.f32 %v1685_v23, 0.0 }
 0x49b   :  { %v1741_v53 = vpack.c.bf16 %v1723_v48, %v1721_v47  ;;  %v3972_v47 = vld [vmem:[#allocation2 + $0x620] ss:$8 sps:$4 sm:$0xff]  }
 0x49c   :  { %v1742_v35 = vpack.c.bf16 %v1724_v51, %v1722_v49  ;;  %v1688_v54 = vpop.f32.mrb[92].mxu0  ;;  %v3977_v51 = vld [vmem:[#allocation2 + $0x634] ss:$8 sps:$4 sm:$0xff]  }
 0x49d   :  { %v1689_v56 = vadd.f32 %v1688_v54, %v4384_v20  ;;  %v1690_v37 = vpop.f32.mrb[93].mxu0 }
 0x49e   :  { %v1691_v57 = vadd.f32 %v1690_v37, %v4387_v24  ;;  %v1692_v58 = vpop.f32.mrb[94].mxu0  ;;  %2043 = vmatprep.mubr.bf16.mxu1 %v1742_v35  ;;  %v3975_v37 = vld [vmem:[#allocation2 + $0x630] ss:$8 sps:$4 sm:$0xff]  }
 0x49f   :  { %v1693_v59 = vadd.f32 %v1692_v58, %v4384_v20  ;;  %v1694_v60 = vpop.f32.mrb[95].mxu0  ;;  %2044 = vmatmul.mubr.bf16.gmra.mrb[88].mxu1 %v1741_v53  ;;  %v1725_v1 = vmax.f32 %v1689_v56, 0.0 }
 0x4a0   :  { %v1695_v61 = vadd.f32 %v1694_v60, %v4387_v24  ;;  %v1726_v3 = vmax.f32 %v1691_v57, 0.0 }
 0x4a1   :  { %v1727_v2 = vmax.f32 %v1693_v59, 0.0  ;;  %v3980_v59 = vld [vmem:[#allocation2 + $0x644] ss:$8 sps:$4 sm:$0xff]  }
 0x4a2   :  { %v1728_v4 = vmax.f32 %v1695_v61, 0.0 }
 0x4a3   :  { %v1743_v5 = vpack.c.bf16 %v1727_v2, %v1725_v1 }
 0x4a4   :  { %v1744_v6 = vpack.c.bf16 %v1728_v4, %v1726_v3  ;;  %v3978_v4 = vld [vmem:[#allocation2 + $0x640] ss:$8 sps:$4 sm:$0xff]  }
 0x4a6   :  { %2053 = vmatprep.mubr.bf16.mxu1 %v1744_v6 }
 0x4a7   :  { %2054 = vmatmul.mubr.bf16.gmra.mrb[92].mxu1 %v1743_v5 }
 0x4a8   :  { %2108 = vmatprep.mubr.bf16.mxu1 %v4057_v0 }
 0x4af   :  { %3435 = vmatmul.mubr.msk.bf16.vlgmr.msra.gmra.mrb[64].mxu1 %vm86_vm1, %v4127_v7  ;;  %v3962_v7 = vld [vmem:[#allocation2 + $0x5e4] ss:$8 sps:$4 sm:$0xff]  }
 0x4b0   :  { %2118 = vmatprep.mubr.bf16.mxu1 %v4057_v0  ;;  %2503 = vmatprep.subr.bf16.mxu0 %v3962_v7  ;;  %v3983_v7 = vld [vmem:[#allocation2 + $0x654] ss:$8 sps:$4 sm:$0xff]  }
 0x4b7   :  { %3436 = vmatmul.mubr.msk.bf16.gmra.mrb[68].mxu1 %vm86_vm1, %v4138_v15  ;;  %v3960_v15 = vld [vmem:[#allocation2 + $0x5e0] ss:$8 sps:$4 sm:$0xff]  }
 0x4b8   :  { %2128 = vmatprep.mubr.bf16.mxu1 %v4057_v0  ;;  %2504 = vmatpush1.bf16.msra.mxu0 %v3960_v15 }
 0x4bf   :  { %3437 = vmatmul.mubr.msk.bf16.gmra.mrb[72].mxu1 %vm86_vm1, %v4149_v22  ;;  %v3965_v22 = vld [vmem:[#allocation2 + $0x5f4] ss:$8 sps:$4 sm:$0xff]  }
 0x4c0   :  { %2138 = vmatprep.mubr.bf16.mxu1 %v4057_v0  ;;  %2505 = vmatprep.subr.bf16.mxu0 %v3965_v22 }
 0x4c7   :  { %3438 = vmatmul.mubr.msk.bf16.gmra.mrb[76].mxu1 %vm86_vm1, %v4160_v29  ;;  %v3963_v29 = vld [vmem:[#allocation2 + $0x5f0] ss:$8 sps:$4 sm:$0xff]  }
 0x4c8   :  { %2148 = vmatprep.mubr.bf16.mxu1 %v4057_v0  ;;  %2506 = vmatpush1.bf16.msra.mxu0 %v3963_v29 }
 0x4cf   :  { %3439 = vmatmul.mubr.msk.bf16.gmra.mrb[80].mxu1 %vm86_vm1, %v4171_v36  ;;  %v3968_v36 = vld [vmem:[#allocation2 + $0x604] ss:$8 sps:$4 sm:$0xff]  }
 0x4d0   :  { %2158 = vmatprep.mubr.bf16.mxu1 %v4057_v0  ;;  %2842 = vmatprep.subr.bf16.mxu0 %v3968_v36 }
 0x4d7   :  { %3440 = vmatmul.mubr.msk.bf16.gmra.mrb[84].mxu1 %vm86_vm1, %v4182_v43  ;;  %v3399_v43 = vld [vmem:[%s4722_s4 + $0x8] sm:$0x3] }
 0x4d8   :  { %2168 = vmatprep.mubr.bf16.mxu1 %v4057_v0 }
 0x4df   :  { %3441 = vmatmul.mubr.msk.bf16.gmra.mrb[88].mxu1 %vm86_vm1, %v4193_v50  ;;  %v4450_v50 = vrot.slane %v3399_v43, %v4208_v32 }
 0x4e0   :  { %2178 = vmatprep.mubr.bf16.mxu1 %v4057_v0  ;;  %v4453_v0 = vrot.slane %v3399_v43, %v4213_v34 }
 0x4e7   :  { %3442 = vmatmul.mubr.msk.bf16.gmra.mrb[92].mxu1 %vm86_vm1, %v4204_v55 }
 0x582   :  { %v2110_v55 = vpop.f32.mrb[64].mxu1 }
 0x583   :  { %v3606_v20 = vadd.f32 %v2110_v55, %v4450_v50  ;;  %v2112_v24 = vpop.f32.mrb[65].mxu1  ;;  %v3981_v55 = vld [vmem:[#allocation2 + $0x650] ss:$8 sps:$4 sm:$0xff]  }
 0x584   :  { %v3607_v8 = vadd.f32 %v2112_v24, %v4453_v0  ;;  %v2114_v9 = vpop.f32.mrb[66].mxu1 }
 0x585   :  { %v3608_v12 = vadd.f32 %v2114_v9, %v4450_v50  ;;  %v2116_v13 = vpop.f32.mrb[67].mxu1  ;;  %v2221_v16 = vmax.f32 %v3606_v20, 0.0 }
 0x586   :  { %v3609_v14 = vadd.f32 %v2116_v13, %v4453_v0  ;;  %v2222_v18 = vmax.f32 %v3607_v8, 0.0  ;;  %v3986_v8 = vld [vmem:[#allocation2 + $0x664] ss:$8 sps:$4 sm:$0xff]  }
 0x587   :  { %v2223_v17 = vmax.f32 %v3608_v12, 0.0 }
 0x588   :  { %v2224_v62 = vmax.f32 %v3609_v14, 0.0 }
 0x589   :  { %v2253_v63 = vpack.c.bf16 %v2223_v17, %v2221_v16  ;;  %v3984_v17 = vld [vmem:[#allocation2 + $0x660] ss:$8 sps:$4 sm:$0xff]  }
 0x58a   :  { %v2254_v19 = vpack.c.bf16 %v2224_v62, %v2222_v18  ;;  %v2120_v25 = vpop.f32.mrb[68].mxu1 }
 0x58b   :  { %v3610_v27 = vadd.f32 %v2120_v25, %v4450_v50  ;;  %v2122_v28 = vpop.f32.mrb[69].mxu1 }
 0x58c   :  { %v3611_v10 = vadd.f32 %v2122_v28, %v4453_v0  ;;  %v2124_v31 = vpop.f32.mrb[70].mxu1  ;;  %2507 = vmatprep.mubr.bf16.mxu0 %v2254_v19 }
 0x58d   :  { %v3612_v33 = vadd.f32 %v2124_v31, %v4450_v50  ;;  %v2126_v11 = vpop.f32.mrb[71].mxu1  ;;  %2508 = vmatmul.mubr.bf16.vlgmr.msra.gmra.mrb[96].mxu0 %v2253_v63  ;;  %v2225_v40 = vmax.f32 %v3610_v27, 0.0  ;;  %v3989_v63 = vld [vmem:[#allocation2 + $0x674] ss:$8 sps:$4 sm:$0xff]  }
 0x58e   :  { %v3613_v38 = vadd.f32 %v2126_v11, %v4453_v0  ;;  %2843 = vmatpush1.bf16.msra.mxu0 %v3966_v26  ;;  %v2226_v44 = vmax.f32 %v3611_v10, 0.0 }
 0x58f   :  { %v2227_v41 = vmax.f32 %v3612_v33, 0.0  ;;  %2844 = vmatprep.subr.bf16.mxu0 %v3971_v30  ;;  %v3987_v30 = vld [vmem:[#allocation2 + $0x670] ss:$8 sps:$4 sm:$0xff]   ;;  %v3992_v33 = vld [vmem:[#allocation2 + $0x684] ss:$8 sps:$4 sm:$0xff]  }
 0x590   :  { %v2228_v21 = vmax.f32 %v3613_v38, 0.0 }
 0x591   :  { %v2255_v45 = vpack.c.bf16 %v2227_v41, %v2225_v40 }
 0x592   :  { %v2256_v46 = vpack.c.bf16 %v2228_v21, %v2226_v44  ;;  %v2130_v23 = vpop.f32.mrb[72].mxu1  ;;  %2845 = vmatpush1.bf16.msra.mxu0 %v3969_v39 }
 0x593   :  { %v3614_v48 = vadd.f32 %v2130_v23, %v4450_v50  ;;  %v2132_v49 = vpop.f32.mrb[73].mxu1  ;;  %2846 = vmatprep.subr.bf16.mxu0 %v3974_v42  ;;  %v3990_v42 = vld [vmem:[#allocation2 + $0x680] ss:$8 sps:$4 sm:$0xff]  }
 0x594   :  { %v3615_v52 = vadd.f32 %v2132_v49, %v4453_v0  ;;  %v2134_v53 = vpop.f32.mrb[74].mxu1  ;;  %2517 = vmatprep.mubr.bf16.mxu0 %v2256_v46 }
 0x595   :  { %v3616_v35 = vadd.f32 %v2134_v53, %v4450_v50  ;;  %v2136_v54 = vpop.f32.mrb[75].mxu1  ;;  %2518 = vmatmul.mubr.bf16.gmra.mrb[100].mxu0 %v2255_v45  ;;  %v2229_v57 = vmax.f32 %v3614_v48, 0.0  ;;  %v3995_v45 = vld [vmem:[#allocation2 + $0x694] ss:$8 sps:$4 sm:$0xff]  }
 0x596   :  { %v3617_v56 = vadd.f32 %v2136_v54, %v4453_v0  ;;  %2847 = vmatpush1.bf16.msra.mxu0 %v3972_v47  ;;  %v2230_v60 = vmax.f32 %v3615_v52, 0.0 }
 0x597   :  { %v2231_v58 = vmax.f32 %v3616_v35, 0.0  ;;  %2848 = vmatprep.subr.bf16.mxu0 %v3977_v51  ;;  %v3993_v51 = vld [vmem:[#allocation2 + $0x690] ss:$8 sps:$4 sm:$0xff]   ;;  %v3998_v35 = vld [vmem:[#allocation2 + $0x6a4] ss:$8 sps:$4 sm:$0xff]  }
 0x598   :  { %v2232_v61 = vmax.f32 %v3617_v56, 0.0 }
 0x599   :  { %v2257_v1 = vpack.c.bf16 %v2231_v58, %v2229_v57 }
 0x59a   :  { %v2258_v2 = vpack.c.bf16 %v2232_v61, %v2230_v60  ;;  %v2140_v3 = vpop.f32.mrb[76].mxu1  ;;  %2849 = vmatpush1.bf16.msra.mxu0 %v3975_v37 }
 0x59b   :  { %v3618_v5 = vadd.f32 %v2140_v3, %v4450_v50  ;;  %v2142_v6 = vpop.f32.mrb[77].mxu1  ;;  %2850 = vmatprep.subr.bf16.mxu0 %v3980_v59  ;;  %v3996_v59 = vld [vmem:[#allocation2 + $0x6a0] ss:$8 sps:$4 sm:$0xff]  }
 0x59c   :  { %v3619_v15 = vadd.f32 %v2142_v6, %v4453_v0  ;;  %v2144_v22 = vpop.f32.mrb[78].mxu1  ;;  %2527 = vmatprep.mubr.bf16.mxu0 %v2258_v2 }
 0x59d   :  { %v3620_v29 = vadd.f32 %v2144_v22, %v4450_v50  ;;  %v2146_v36 = vpop.f32.mrb[79].mxu1  ;;  %2528 = vmatmul.mubr.bf16.gmra.mrb[104].mxu0 %v2257_v1  ;;  %v2233_v20 = vmax.f32 %v3618_v5, 0.0  ;;  %v4001_v1 = vld [vmem:[#allocation2 + $0x6b4] ss:$8 sps:$4 sm:$0xff]  }
 0x59e   :  { %v3621_v43 = vadd.f32 %v2146_v36, %v4453_v0  ;;  %2851 = vmatpush1.bf16.msra.mxu0 %v3978_v4  ;;  %v2234_v9 = vmax.f32 %v3619_v15, 0.0 }
 0x59f   :  { %v2235_v24 = vmax.f32 %v3620_v29, 0.0  ;;  %2852 = vmatprep.subr.bf16.mxu0 %v3983_v7  ;;  %v3999_v7 = vld [vmem:[#allocation2 + $0x6b0] ss:$8 sps:$4 sm:$0xff]   ;;  %v4004_v29 = vld [vmem:[#allocation2 + $0x6c4] ss:$8 sps:$4 sm:$0xff]  }
 0x5a0   :  { %v2236_v12 = vmax.f32 %v3621_v43, 0.0 }
 0x5a1   :  { %v2259_v13 = vpack.c.bf16 %v2235_v24, %v2233_v20 }
 0x5a2   :  { %v2260_v14 = vpack.c.bf16 %v2236_v12, %v2234_v9  ;;  %v2150_v16 = vpop.f32.mrb[80].mxu1  ;;  %2853 = vmatpush1.bf16.msra.mxu0 %v3981_v55 }
 0x5a3   :  { %v3622_v18 = vadd.f32 %v2150_v16, %v4450_v50  ;;  %v2152_v62 = vpop.f32.mrb[81].mxu1  ;;  %2854 = vmatprep.subr.bf16.mxu0 %v3986_v8  ;;  %v4002_v8 = vld [vmem:[#allocation2 + $0x6c0] ss:$8 sps:$4 sm:$0xff]  }
 0x5a4   :  { %v3623_v19 = vadd.f32 %v2152_v62, %v4453_v0  ;;  %v2154_v25 = vpop.f32.mrb[82].mxu1  ;;  %2537 = vmatprep.mubr.bf16.mxu0 %v2260_v14 }
 0x5a5   :  { %v3624_v26 = vadd.f32 %v2154_v25, %v4450_v50  ;;  %v2156_v27 = vpop.f32.mrb[83].mxu1  ;;  %2538 = vmatmul.mubr.bf16.gmra.mrb[108].mxu0 %v2259_v13  ;;  %v2237_v10 = vmax.f32 %v3622_v18, 0.0  ;;  %v4007_v13 = vld [vmem:[#allocation2 + $0x6d4] ss:$8 sps:$4 sm:$0xff]  }
 0x5a6   :  { %v3625_v28 = vadd.f32 %v2156_v27, %v4453_v0  ;;  %2855 = vmatpush1.bf16.msra.mxu0 %v3984_v17  ;;  %v2238_v11 = vmax.f32 %v3623_v19, 0.0 }
 0x5a7   :  { %v2239_v31 = vmax.f32 %v3624_v26, 0.0  ;;  %2856 = vmatprep.subr.bf16.mxu0 %v3989_v63  ;;  %v4005_v63 = vld [vmem:[#allocation2 + $0x6d0] ss:$8 sps:$4 sm:$0xff]  }
 0x5a8   :  { %v2240_v38 = vmax.f32 %v3625_v28, 0.0 }
 0x5a9   :  { %v2261_v39 = vpack.c.bf16 %v2239_v31, %v2237_v10  ;;  %v4010_v10 = vld [vmem:[#allocation2 + $0x6e4] ss:$8 sps:$4 sm:$0xff]   ;;  %v4008_v31 = vld [vmem:[#allocation2 + $0x6e0] ss:$8 sps:$4 sm:$0xff]  }
 0x5aa   :  { %v2262_v40 = vpack.c.bf16 %v2240_v38, %v2238_v11  ;;  %v2160_v41 = vpop.f32.mrb[84].mxu1  ;;  %2857 = vmatpush1.bf16.msra.mxu0 %v3987_v30  ;;  %v4015_v11 = vld [vmem:[%s4724_s6] sm:$0xff]   ;;  %v4016_v38 = vld [vmem:[%s4724_s6 + $0x48] sm:$0xff]  }
 0x5ab   :  { %v3626_v44 = vadd.f32 %v2160_v41, %v4450_v50  ;;  %v2162_v21 = vpop.f32.mrb[85].mxu1  ;;  %2858 = vmatprep.subr.bf16.mxu0 %v3992_v33  ;;  %v4011_v33 = vld [vmem:[#allocation2 + $0x6f0] ss:$8 sps:$4 sm:$0xff]  }
 0x5ac   :  { %v3627_v46 = vadd.f32 %v2162_v21, %v4453_v0  ;;  %v2164_v23 = vpop.f32.mrb[86].mxu1  ;;  %2547 = vmatprep.mubr.bf16.mxu0 %v2262_v40  ;;  %v4018_v40 = vld [vmem:[%s4724_s6 + $0x50] sm:$0xff]   ;;  %v4516_v21 = vld [vmem:[%s4724_s6 + $0x60] sm:$0xff]  }
 0x5ad   :  { %v3628_v47 = vadd.f32 %v2164_v23, %v4450_v50  ;;  %v2166_v48 = vpop.f32.mrb[87].mxu1  ;;  %2548 = vmatmul.mubr.bf16.gmra.mrb[112].mxu0 %v2261_v39  ;;  %v2241_v52 = vmax.f32 %v3626_v44, 0.0  ;;  %v4017_v39 = vld [vmem:[%s4724_s6 + $0x8] sm:$0xff]   ;;  %v4019_v41 = vld [vmem:[%s4724_s6 + $0x10] sm:$0xff]   ;;  %v4511_v44 = vld [vmem:[%s4724_s6 + $0x18] sm:$0xff]  }
 0x5ae   :  { %v3629_v49 = vadd.f32 %v2166_v48, %v4453_v0  ;;  %2859 = vmatpush1.bf16.msra.mxu0 %v3990_v42  ;;  %v2242_v54 = vmax.f32 %v3627_v46, 0.0  ;;  %v4020_v42 = vld [vmem:[%s4724_s6 + $0x58] sm:$0xff]   ;;  %v4528_v46 = vld [vmem:[%s4724_s6 + $0x68] sm:$0xff]  }
 0x5af   :  { %v2243_v53 = vmax.f32 %v3628_v47, 0.0  ;;  %2860 = vmatprep.subr.bf16.mxu0 %v3995_v45  ;;  %v4523_v45 = vld [vmem:[%s4724_s6 + $0x20] sm:$0xff]   ;;  %v3443_v23 = vld [vmem:[%s4722_s4 + $0xa] sm:$0x3] }
 0x5b0   :  { %v2244_v56 = vmax.f32 %v3629_v49, 0.0  ;;  %v4536_v47 = vrot.slane %v3443_v23, %v4208_v32  ;;  %v4539_v48 = vrot.slane %v3443_v23, %v4213_v34 }
 0x5b1   :  { %v2263_v37 = vpack.c.bf16 %v2243_v53, %v2241_v52 }
 0x5b2   :  { %v2264_v57 = vpack.c.bf16 %v2244_v56, %v2242_v54  ;;  %v2170_v58 = vpop.f32.mrb[88].mxu1  ;;  %2861 = vmatpush1.bf16.msra.mxu0 %v3993_v51 }
 0x5b3   :  { %v3630_v60 = vadd.f32 %v2170_v58, %v4450_v50  ;;  %v2172_v61 = vpop.f32.mrb[89].mxu1  ;;  %2862 = vmatprep.subr.bf16.mxu0 %v3998_v35 }
 0x5b4   :  { %v3631_v2 = vadd.f32 %v2172_v61, %v4453_v0  ;;  %v2174_v3 = vpop.f32.mrb[90].mxu1  ;;  %2557 = vmatprep.mubr.bf16.mxu0 %v2264_v57 }
 0x5b5   :  { %v3632_v4 = vadd.f32 %v2174_v3, %v4450_v50  ;;  %v2176_v5 = vpop.f32.mrb[91].mxu1  ;;  %2558 = vmatmul.mubr.bf16.gmra.mrb[116].mxu0 %v2263_v37  ;;  %v2245_v15 = vmax.f32 %v3630_v60, 0.0 }
 0x5b6   :  { %v3633_v6 = vadd.f32 %v2176_v5, %v4453_v0  ;;  %2863 = vmatpush1.bf16.msra.mxu0 %v3996_v59  ;;  %v2246_v36 = vmax.f32 %v3631_v2, 0.0 }
 0x5b7   :  { %v2247_v22 = vmax.f32 %v3632_v4, 0.0  ;;  %2864 = vmatprep.subr.bf16.mxu0 %v4001_v1 }
 0x5b8   :  { %v2248_v43 = vmax.f32 %v3633_v6, 0.0 }
 0x5b9   :  { %v2265_v55 = vpack.c.bf16 %v2247_v22, %v2245_v15 }
 0x5ba   :  { %v2266_v20 = vpack.c.bf16 %v2248_v43, %v2246_v36  ;;  %v2180_v24 = vpop.f32.mrb[92].mxu1  ;;  %2865 = vmatpush1.bf16.msra.mxu0 %v3999_v7 }
 0x5bb   :  { %v3634_v9 = vadd.f32 %v2180_v24, %v4450_v50  ;;  %v2182_v12 = vpop.f32.mrb[93].mxu1  ;;  %2866 = vmatprep.subr.bf16.mxu0 %v4004_v29 }
 0x5bc   :  { %v3635_v14 = vadd.f32 %v2182_v12, %v4453_v0  ;;  %v2184_v16 = vpop.f32.mrb[94].mxu1  ;;  %2567 = vmatprep.mubr.bf16.mxu0 %v2266_v20 }
 0x5bd   :  { %v3636_v17 = vadd.f32 %v2184_v16, %v4450_v50  ;;  %v2186_v18 = vpop.f32.mrb[95].mxu1  ;;  %2568 = vmatmul.mubr.bf16.gmra.mrb[120].mxu0 %v2265_v55  ;;  %v2249_v19 = vmax.f32 %v3634_v9, 0.0  ;;  %v4013_v50 = vld [vmem:[#allocation2 + $0x6f4] ss:$8 sps:$4 sm:$0xff]  }
 0x5be   :  { %v3637_v62 = vadd.f32 %v2186_v18, %v4453_v0  ;;  %2867 = vmatpush1.bf16.msra.mxu0 %v4002_v8  ;;  %v2250_v26 = vmax.f32 %v3635_v14, 0.0  ;;  %v4014_v0 = vld [vmem:[%s4724_s6 + $0x40] sm:$0xff]  }
 0x5bf   :  { %v2251_v25 = vmax.f32 %v3636_v17, 0.0  ;;  %2868 = vmatprep.subr.bf16.mxu0 %v4007_v13  ;;  %3590 = vmatprep.subr.bf16.mxu1 %v4014_v0 }
 0x5c0   :  { %v2252_v27 = vmax.f32 %v3637_v62, 0.0  ;;  %3598 = vmatpush3.bf16.msra.mxu1 %v4015_v11 }
 0x5c1   :  { %v2267_v28 = vpack.c.bf16 %v2251_v25, %v2249_v19  ;;  %3591 = vmatprep.subr.bf16.mxu1 %v4016_v38 }
 0x5c2   :  { %v2268_v30 = vpack.c.bf16 %v2252_v27, %v2250_v26  ;;  %2869 = vmatpush1.bf16.msra.mxu0 %v4005_v63 }
 0x5c3   :  { %2870 = vmatprep.subr.bf16.mxu0 %v4010_v10 }
 0x5c4   :  { %2577 = vmatprep.mubr.bf16.mxu0 %v2268_v30  ;;  %3599 = vmatpush3.bf16.msra.mxu1 %v4017_v39 }
 0x5c5   :  { %2578 = vmatmul.mubr.bf16.gmra.mrb[124].mxu0 %v2267_v28  ;;  %3592 = vmatprep.subr.bf16.mxu1 %v4018_v40 }
 0x5c6   :  { %2871 = vmatpush1.bf16.msra.mxu0 %v4008_v31 }
 0x5c7   :  { %2872 = vmatprep.subr.bf16.mxu0 %v4013_v50 }
 0x5c8   :  { %3600 = vmatpush3.bf16.msra.mxu1 %v4019_v41 }
 0x5c9   :  { %3593 = vmatprep.subr.bf16.mxu1 %v4020_v42 }
 0x5ca   :  { %2873 = vmatpush1.bf16.msra.mxu0 %v4011_v33 }
 0x5cb   :  { %3526 = vmatprep.subr.bf16.mxu0 %v4014_v0 }
 0x5cc   :  { %3601 = vmatpush3.bf16.msra.mxu1 %v4511_v44 }
 0x5cd   :  { %3594 = vmatprep.subr.bf16.mxu1 %v4516_v21 }
 0x5d0   :  { %3602 = vmatpush3.bf16.msra.mxu1 %v4523_v45 }
 0x5d1   :  { %3595 = vmatprep.subr.bf16.mxu1 %v4528_v46 }
 0x660   :  { %v2509_v49 = vpop.f32.mrb[96].mxu0 }
 0x661   :  { %v2510_v51 = vadd.f32 %v2509_v49, %v4536_v47  ;;  %v2511_v52 = vpop.f32.mrb[97].mxu0 }
 0x662   :  { %v2512_v53 = vadd.f32 %v2511_v52, %v4539_v48  ;;  %v2513_v35 = vpop.f32.mrb[98].mxu0 }
 0x663   :  { %v2514_v54 = vadd.f32 %v2513_v35, %v4536_v47  ;;  %v2515_v56 = vpop.f32.mrb[99].mxu0  ;;  %v2588_v57 = vmax.f32 %v2510_v51, 0.0 }
 0x664   :  { %v2516_v37 = vadd.f32 %v2515_v56, %v4539_v48  ;;  %v2589_v59 = vmax.f32 %v2512_v53, 0.0 }
 0x665   :  { %v2590_v58 = vmax.f32 %v2514_v54, 0.0 }
 0x666   :  { %v2591_v60 = vmax.f32 %v2516_v37, 0.0 }
 0x667   :  { %v2620_v61 = vpack.c.bf16 %v2590_v58, %v2588_v57 }
 0x668   :  { %v2621_v1 = vpack.c.bf16 %v2591_v60, %v2589_v59  ;;  %v2519_v2 = vpop.f32.mrb[100].mxu0 }
 0x669   :  { %v2520_v3 = vadd.f32 %v2519_v2, %v4536_v47  ;;  %v2521_v4 = vpop.f32.mrb[101].mxu0 }
 0x66a   :  { %v2522_v5 = vadd.f32 %v2521_v4, %v4539_v48  ;;  %v2523_v6 = vpop.f32.mrb[102].mxu0  ;;  %2874 = vmatprep.mubr.bf16.mxu0 %v2621_v1 }
 0x66b   :  { %v2524_v7 = vadd.f32 %v2523_v6, %v4536_v47  ;;  %v2525_v15 = vpop.f32.mrb[103].mxu0  ;;  %2875 = vmatmul.mubr.bf16.vlgmr.msra.gmra.mrb[128].mxu0 %v2620_v61  ;;  %v2592_v29 = vmax.f32 %v2520_v3, 0.0 }
 0x66c   :  { %v2526_v22 = vadd.f32 %v2525_v15, %v4539_v48  ;;  %3527 = vmatpush3.bf16.msra.mxu0 %v4015_v11  ;;  %v2593_v43 = vmax.f32 %v2522_v5, 0.0 }
 0x66d   :  { %v2594_v36 = vmax.f32 %v2524_v7, 0.0  ;;  %3528 = vmatprep.subr.bf16.mxu0 %v4016_v38 }
 0x66e   :  { %v2595_v55 = vmax.f32 %v2526_v22, 0.0 }
 0x66f   :  { %v2622_v20 = vpack.c.bf16 %v2594_v36, %v2592_v29 }
 0x670   :  { %v2623_v24 = vpack.c.bf16 %v2595_v55, %v2593_v43  ;;  %v2529_v8 = vpop.f32.mrb[104].mxu0  ;;  %3529 = vmatpush3.bf16.msra.mxu0 %v4017_v39 }
 0x671   :  { %v2530_v9 = vadd.f32 %v2529_v8, %v4536_v47  ;;  %v2531_v12 = vpop.f32.mrb[105].mxu0  ;;  %3530 = vmatprep.subr.bf16.mxu0 %v4018_v40 }
 0x672   :  { %v2532_v13 = vadd.f32 %v2531_v12, %v4539_v48  ;;  %v2533_v14 = vpop.f32.mrb[106].mxu0  ;;  %2884 = vmatprep.mubr.bf16.mxu0 %v2623_v24 }
 0x673   :  { %v2534_v16 = vadd.f32 %v2533_v14, %v4536_v47  ;;  %v2535_v17 = vpop.f32.mrb[107].mxu0  ;;  %2885 = vmatmul.mubr.bf16.gmra.mrb[132].mxu0 %v2622_v20  ;;  %v2596_v62 = vmax.f32 %v2530_v9, 0.0 }
 0x674   :  { %v2536_v18 = vadd.f32 %v2535_v17, %v4539_v48  ;;  %3531 = vmatpush3.bf16.msra.mxu0 %v4019_v41  ;;  %v2597_v19 = vmax.f32 %v2532_v13, 0.0 }
 0x675   :  { %v2598_v63 = vmax.f32 %v2534_v16, 0.0  ;;  %3532 = vmatprep.subr.bf16.mxu0 %v4020_v42 }
 0x676   :  { %v2599_v25 = vmax.f32 %v2536_v18, 0.0 }
 0x677   :  { %v2624_v26 = vpack.c.bf16 %v2598_v63, %v2596_v62 }
 0x678   :  { %v2625_v27 = vpack.c.bf16 %v2599_v25, %v2597_v19  ;;  %v2539_v28 = vpop.f32.mrb[108].mxu0  ;;  %3533 = vmatpush3.bf16.msra.mxu0 %v4511_v44 }
 0x679   :  { %v2540_v30 = vadd.f32 %v2539_v28, %v4536_v47  ;;  %v2541_v10 = vpop.f32.mrb[109].mxu0  ;;  %3534 = vmatprep.subr.bf16.mxu0 %v4516_v21 }
 0x67a   :  { %v2542_v31 = vadd.f32 %v2541_v10, %v4539_v48  ;;  %v2543_v50 = vpop.f32.mrb[110].mxu0  ;;  %2894 = vmatprep.mubr.bf16.mxu0 %v2625_v27 }
 0x67b   :  { %v2544_v33 = vadd.f32 %v2543_v50, %v4536_v47  ;;  %v2545_v0 = vpop.f32.mrb[111].mxu0  ;;  %2895 = vmatmul.mubr.bf16.gmra.mrb[136].mxu0 %v2624_v26  ;;  %v2600_v38 = vmax.f32 %v2540_v30, 0.0 }
 0x67c   :  { %v2546_v11 = vadd.f32 %v2545_v0, %v4539_v48  ;;  %3535 = vmatpush3.bf16.msra.mxu0 %v4523_v45  ;;  %v2601_v40 = vmax.f32 %v2542_v31, 0.0 }
 0x67d   :  { %v2602_v39 = vmax.f32 %v2544_v33, 0.0  ;;  %3536 = vmatprep.subr.bf16.mxu0 %v4528_v46 }
 0x67e   :  { %v2603_v41 = vmax.f32 %v2546_v11, 0.0 }
 0x67f   :  { %v2626_v42 = vpack.c.bf16 %v2602_v39, %v2600_v38 }
 0x680   :  { %v2627_v44 = vpack.c.bf16 %v2603_v41, %v2601_v40  ;;  %v2549_v21 = vpop.f32.mrb[112].mxu0  ;;  %v4025_v40 = vld [vmem:[%s4724_s6 + $0x28] sm:$0xff]   ;;  %v4028_v41 = vld [vmem:[%s4724_s6 + $0x78] sm:$0xff]  }
 0x681   :  { %v2550_v23 = vadd.f32 %v2549_v21, %v4536_v47  ;;  %v2551_v49 = vpop.f32.mrb[113].mxu0  ;;  %3537 = vmatpush3.bf16.msra.mxu0 %v4025_v40  ;;  %3603 = vmatpush3.bf16.msra.mxu1 %v4025_v40 }
 0x682   :  { %v2552_v51 = vadd.f32 %v2551_v49, %v4539_v48  ;;  %v2553_v52 = vpop.f32.mrb[114].mxu0  ;;  %2904 = vmatprep.mubr.bf16.mxu0 %v2627_v44  ;;  %v3476_v44 = vld [vmem:[%s4722_s4 + $0xc] sm:$0x3] }
 0x683   :  { %v2554_v53 = vadd.f32 %v2553_v52, %v4536_v47  ;;  %v2555_v35 = vpop.f32.mrb[115].mxu0  ;;  %2905 = vmatmul.mubr.bf16.gmra.mrb[140].mxu0 %v2626_v42  ;;  %v2604_v54 = vmax.f32 %v2550_v23, 0.0  ;;  %v4029_v42 = vld [vmem:[%s4724_s6 + $0x38] sm:$0xff]   ;;  %v4596_v21 = vrot.slane %v3476_v44, %v4208_v32  ;;  %v4599_v23 = vrot.slane %v3476_v44, %v4213_v34 }
 0x684   :  { %v2556_v45 = vadd.f32 %v2555_v35, %v4539_v48  ;;  %v2605_v56 = vmax.f32 %v2552_v51, 0.0 }
 0x685   :  { %v2606_v46 = vmax.f32 %v2554_v53, 0.0 }
 0x686   :  { %v2607_v37 = vmax.f32 %v2556_v45, 0.0 }
 0x687   :  { %v2628_v57 = vpack.c.bf16 %v2606_v46, %v2604_v54 }
 0x688   :  { %v2629_v58 = vpack.c.bf16 %v2607_v37, %v2605_v56  ;;  %v2559_v59 = vpop.f32.mrb[116].mxu0 }
 0x689   :  { %v2560_v60 = vadd.f32 %v2559_v59, %v4536_v47  ;;  %v2561_v61 = vpop.f32.mrb[117].mxu0 }
 0x68a   :  { %v2562_v1 = vadd.f32 %v2561_v61, %v4539_v48  ;;  %v2563_v2 = vpop.f32.mrb[118].mxu0  ;;  %2914 = vmatprep.mubr.bf16.mxu0 %v2629_v58 }
 0x68b   :  { %v2564_v3 = vadd.f32 %v2563_v2, %v4536_v47  ;;  %v2565_v4 = vpop.f32.mrb[119].mxu0  ;;  %2915 = vmatmul.mubr.bf16.gmra.mrb[144].mxu0 %v2628_v57  ;;  %v2608_v6 = vmax.f32 %v2560_v60, 0.0 }
 0x68c   :  { %v2566_v5 = vadd.f32 %v2565_v4, %v4539_v48  ;;  %v2609_v15 = vmax.f32 %v2562_v1, 0.0 }
 0x68d   :  { %v2610_v7 = vmax.f32 %v2564_v3, 0.0 }
 0x68e   :  { %v2611_v22 = vmax.f32 %v2566_v5, 0.0 }
 0x68f   :  { %v2630_v29 = vpack.c.bf16 %v2610_v7, %v2608_v6 }
 0x690   :  { %v2631_v36 = vpack.c.bf16 %v2611_v22, %v2609_v15  ;;  %v2569_v43 = vpop.f32.mrb[120].mxu0 }
 0x691   :  { %v2570_v55 = vadd.f32 %v2569_v43, %v4536_v47  ;;  %v2571_v20 = vpop.f32.mrb[121].mxu0 }
 0x692   :  { %v2572_v24 = vadd.f32 %v2571_v20, %v4539_v48  ;;  %v2573_v8 = vpop.f32.mrb[122].mxu0  ;;  %2924 = vmatprep.mubr.bf16.mxu0 %v2631_v36 }
 0x693   :  { %v2574_v9 = vadd.f32 %v2573_v8, %v4536_v47  ;;  %v2575_v12 = vpop.f32.mrb[123].mxu0  ;;  %2925 = vmatmul.mubr.bf16.gmra.mrb[148].mxu0 %v2630_v29  ;;  %v2612_v14 = vmax.f32 %v2570_v55, 0.0 }
 0x694   :  { %v2576_v13 = vadd.f32 %v2575_v12, %v4539_v48  ;;  %v2613_v17 = vmax.f32 %v2572_v24, 0.0 }
 0x695   :  { %v2614_v16 = vmax.f32 %v2574_v9, 0.0 }
 0x696   :  { %v2615_v18 = vmax.f32 %v2576_v13, 0.0 }
 0x697   :  { %v2632_v62 = vpack.c.bf16 %v2614_v16, %v2612_v14 }
 0x698   :  { %v2633_v63 = vpack.c.bf16 %v2615_v18, %v2613_v17  ;;  %v2579_v19 = vpop.f32.mrb[124].mxu0 }
 0x699   :  { %v2580_v25 = vadd.f32 %v2579_v19, %v4536_v47  ;;  %v2581_v26 = vpop.f32.mrb[125].mxu0 }
 0x69a   :  { %v2582_v27 = vadd.f32 %v2581_v26, %v4539_v48  ;;  %v2583_v28 = vpop.f32.mrb[126].mxu0  ;;  %2934 = vmatprep.mubr.bf16.mxu0 %v2633_v63 }
 0x69b   :  { %v2584_v30 = vadd.f32 %v2583_v28, %v4536_v47  ;;  %v2585_v10 = vpop.f32.mrb[127].mxu0  ;;  %2935 = vmatmul.mubr.bf16.gmra.mrb[152].mxu0 %v2632_v62  ;;  %v2616_v50 = vmax.f32 %v2580_v25, 0.0  ;;  %v4026_v47 = vld [vmem:[%s4724_s6 + $0x70] sm:$0xff]  }
 0x69c   :  { %v2586_v31 = vadd.f32 %v2585_v10, %v4539_v48  ;;  %v2617_v0 = vmax.f32 %v2582_v27, 0.0  ;;  %v4027_v48 = vld [vmem:[%s4724_s6 + $0x30] sm:$0xff]   ;;  %3538 = vmatprep.subr.bf16.mxu0 %v4026_v47  ;;  %3596 = vmatprep.subr.bf16.mxu1 %v4026_v47 }
 0x69d   :  { %v2618_v33 = vmax.f32 %v2584_v30, 0.0  ;;  %3539 = vmatpush3.bf16.msra.mxu0 %v4027_v48  ;;  %3604 = vmatpush3.bf16.msra.mxu1 %v4027_v48 }
 0x69e   :  { %v2619_v11 = vmax.f32 %v2586_v31, 0.0  ;;  %3540 = vmatprep.subr.bf16.mxu0 %v4028_v41  ;;  %3597 = vmatprep.subr.bf16.mxu1 %v4028_v41 }
 0x69f   :  { %v2634_v38 = vpack.c.bf16 %v2618_v33, %v2616_v50 }
 0x6a0   :  { %v2635_v39 = vpack.c.bf16 %v2619_v11, %v2617_v0 }
 0x6a1   :  { %3541 = vmatpush3.bf16.msra.mxu0 %v4029_v42  ;;  %3605 = vmatpush3.bf16.msra.mxu1 %v4029_v42 }
 0x6a2   :  { %2944 = vmatprep.mubr.bf16.mxu0 %v2635_v39 }
 0x6a3   :  { %2945 = vmatmul.mubr.bf16.gmra.mrb[156].mxu0 %v2634_v38 }
 0x73e   :  { %v2876_v49 = vpop.f32.mrb[128].mxu0 }
 0x73f   :  { %v2877_v51 = vadd.f32 %v2876_v49, %v4596_v21  ;;  %v2878_v52 = vpop.f32.mrb[129].mxu0 }
 0x740   :  { %v2879_v53 = vadd.f32 %v2878_v52, %v4599_v23  ;;  %v2880_v35 = vpop.f32.mrb[130].mxu0 }
 0x741   :  { %v2881_v45 = vadd.f32 %v2880_v35, %v4596_v21  ;;  %v2882_v54 = vpop.f32.mrb[131].mxu0  ;;  %v2955_v56 = vmax.f32 %v2877_v51, 0.0 }
 0x742   :  { %v2883_v46 = vadd.f32 %v2882_v54, %v4599_v23  ;;  %v2956_v57 = vmax.f32 %v2879_v53, 0.0 }
 0x743   :  { %v2957_v37 = vmax.f32 %v2881_v45, 0.0 }
 0x744   :  { %v2958_v32 = vmax.f32 %v2883_v46, 0.0 }
 0x745   :  { %v2987_v58 = vpack.c.bf16 %v2957_v37, %v2955_v56 }
 0x746   :  { %v2988_v59 = vpack.c.bf16 %v2958_v32, %v2956_v57  ;;  %v2886_v34 = vpop.f32.mrb[132].mxu0 }
 0x747   :  { %v2887_v60 = vadd.f32 %v2886_v34, %v4596_v21  ;;  %v2888_v61 = vpop.f32.mrb[133].mxu0 }
 0x748   :  { %v2889_v1 = vadd.f32 %v2888_v61, %v4599_v23  ;;  %v2890_v2 = vpop.f32.mrb[134].mxu0  ;;  %3170 = vmatprep.mubr.bf16.mxu0 %v2988_v59 }
 0x749   :  { %v2891_v3 = vadd.f32 %v2890_v2, %v4596_v21  ;;  %v2892_v4 = vpop.f32.mrb[135].mxu0  ;;  %3171 = vmatmul.mubr.bf16.vlgmr.msra.gmra.mrb[160].mxu0 %v2987_v58  ;;  %v2959_v6 = vmax.f32 %v2887_v60, 0.0 }
 0x74a   :  { %v2893_v5 = vadd.f32 %v2892_v4, %v4599_v23  ;;  %v2960_v15 = vmax.f32 %v2889_v1, 0.0 }
 0x74b   :  { %v2961_v7 = vmax.f32 %v2891_v3, 0.0 }
 0x74c   :  { %v2962_v22 = vmax.f32 %v2893_v5, 0.0 }
 0x74d   :  { %v2989_v29 = vpack.c.bf16 %v2961_v7, %v2959_v6 }
 0x74e   :  { %v2990_v36 = vpack.c.bf16 %v2962_v22, %v2960_v15  ;;  %v2896_v43 = vpop.f32.mrb[136].mxu0 }
 0x74f   :  { %v2897_v55 = vadd.f32 %v2896_v43, %v4596_v21  ;;  %v2898_v20 = vpop.f32.mrb[137].mxu0 }
 0x750   :  { %v2899_v24 = vadd.f32 %v2898_v20, %v4599_v23  ;;  %v2900_v8 = vpop.f32.mrb[138].mxu0  ;;  %3178 = vmatprep.mubr.bf16.mxu0 %v2990_v36 }
 0x751   :  { %v2901_v9 = vadd.f32 %v2900_v8, %v4596_v21  ;;  %v2902_v12 = vpop.f32.mrb[139].mxu0  ;;  %3179 = vmatmul.mubr.bf16.gmra.mrb[164].mxu0 %v2989_v29  ;;  %v2963_v14 = vmax.f32 %v2897_v55, 0.0 }
 0x752   :  { %v2903_v13 = vadd.f32 %v2902_v12, %v4599_v23  ;;  %v2964_v17 = vmax.f32 %v2899_v24, 0.0 }
 0x753   :  { %v2965_v16 = vmax.f32 %v2901_v9, 0.0 }
 0x754   :  { %v2966_v18 = vmax.f32 %v2903_v13, 0.0 }
 0x755   :  { %v2991_v62 = vpack.c.bf16 %v2965_v16, %v2963_v14 }
 0x756   :  { %v2992_v63 = vpack.c.bf16 %v2966_v18, %v2964_v17  ;;  %v2906_v19 = vpop.f32.mrb[140].mxu0 }
 0x757   :  { %v2907_v25 = vadd.f32 %v2906_v19, %v4596_v21  ;;  %v2908_v26 = vpop.f32.mrb[141].mxu0 }
 0x758   :  { %v2909_v27 = vadd.f32 %v2908_v26, %v4599_v23  ;;  %v2910_v28 = vpop.f32.mrb[142].mxu0  ;;  %3186 = vmatprep.mubr.bf16.mxu0 %v2992_v63 }
 0x759   :  { %v2911_v30 = vadd.f32 %v2910_v28, %v4596_v21  ;;  %v2912_v10 = vpop.f32.mrb[143].mxu0  ;;  %3187 = vmatmul.mubr.bf16.gmra.mrb[168].mxu0 %v2991_v62  ;;  %v2967_v50 = vmax.f32 %v2907_v25, 0.0 }
 0x75a   :  { %v2913_v31 = vadd.f32 %v2912_v10, %v4599_v23  ;;  %v2968_v0 = vmax.f32 %v2909_v27, 0.0 }
 0x75b   :  { %v2969_v33 = vmax.f32 %v2911_v30, 0.0 }
 0x75c   :  { %v2970_v11 = vmax.f32 %v2913_v31, 0.0 }
 0x75d   :  { %v2993_v38 = vpack.c.bf16 %v2969_v33, %v2967_v50  ;;  %v4636_v33 = vld [vmem:[%s4725_s7] ss:$0 sm:$0xff] }
 0x75e   :  { %v2994_v39 = vpack.c.bf16 %v2970_v11, %v2968_v0  ;;  %v2916_v40 = vpop.f32.mrb[144].mxu0 }
 0x75f   :  { %v2917_v47 = vadd.f32 %v2916_v40, %v4596_v21  ;;  %v2918_v48 = vpop.f32.mrb[145].mxu0 }
 0x760   :  { %v2919_v41 = vadd.f32 %v2918_v48, %v4599_v23  ;;  %v2920_v42 = vpop.f32.mrb[146].mxu0  ;;  %3194 = vmatprep.mubr.bf16.mxu1 %v2994_v39 }
 0x761   :  { %v2921_v44 = vadd.f32 %v2920_v42, %v4596_v21  ;;  %v2922_v49 = vpop.f32.mrb[147].mxu0  ;;  %3195 = vmatmul.mubr.bf16.vlgmr.msra.gmra.mrb[96].mxu1 %v2993_v38  ;;  %v2971_v52 = vmax.f32 %v2917_v47, 0.0 }
 0x762   :  { %v2923_v51 = vadd.f32 %v2922_v49, %v4599_v23  ;;  %v2972_v35 = vmax.f32 %v2919_v41, 0.0 }
 0x763   :  { %v2973_v53 = vmax.f32 %v2921_v44, 0.0 }
 0x764   :  { %v2974_v45 = vmax.f32 %v2923_v51, 0.0 }
 0x765   :  { %v2995_v54 = vpack.c.bf16 %v2973_v53, %v2971_v52 }
 0x766   :  { %v2996_v46 = vpack.c.bf16 %v2974_v45, %v2972_v35  ;;  %v2926_v56 = vpop.f32.mrb[148].mxu0 }
 0x767   :  { %v2927_v37 = vadd.f32 %v2926_v56, %v4596_v21  ;;  %v2928_v57 = vpop.f32.mrb[149].mxu0 }
 0x768   :  { %v2929_v32 = vadd.f32 %v2928_v57, %v4599_v23  ;;  %v2930_v58 = vpop.f32.mrb[150].mxu0  ;;  %3202 = vmatprep.mubr.bf16.mxu1 %v2996_v46 }
 0x769   :  { %v2931_v59 = vadd.f32 %v2930_v58, %v4596_v21  ;;  %v2932_v34 = vpop.f32.mrb[151].mxu0  ;;  %3203 = vmatmul.mubr.bf16.gmra.mrb[100].mxu1 %v2995_v54  ;;  %v2975_v61 = vmax.f32 %v2927_v37, 0.0 }
 0x76a   :  { %v2933_v60 = vadd.f32 %v2932_v34, %v4599_v23  ;;  %v2976_v2 = vmax.f32 %v2929_v32, 0.0 }
 0x76b   :  { %v2977_v1 = vmax.f32 %v2931_v59, 0.0 }
 0x76c   :  { %v2978_v3 = vmax.f32 %v2933_v60, 0.0 }
 0x76d   :  { %v2997_v4 = vpack.c.bf16 %v2977_v1, %v2975_v61 }
 0x76e   :  { %v2998_v5 = vpack.c.bf16 %v2978_v3, %v2976_v2  ;;  %v2936_v6 = vpop.f32.mrb[152].mxu0 }
 0x76f   :  { %v2937_v7 = vadd.f32 %v2936_v6, %v4596_v21  ;;  %v2938_v15 = vpop.f32.mrb[153].mxu0 }
 0x770   :  { %v2939_v22 = vadd.f32 %v2938_v15, %v4599_v23  ;;  %v2940_v29 = vpop.f32.mrb[154].mxu0  ;;  %3210 = vmatprep.mubr.bf16.mxu1 %v2998_v5 }
 0x771   :  { %v2941_v36 = vadd.f32 %v2940_v29, %v4596_v21  ;;  %v2942_v43 = vpop.f32.mrb[155].mxu0  ;;  %3211 = vmatmul.mubr.bf16.gmra.mrb[104].mxu1 %v2997_v4  ;;  %v2979_v20 = vmax.f32 %v2937_v7, 0.0 }
 0x772   :  { %v2943_v55 = vadd.f32 %v2942_v43, %v4599_v23  ;;  %v2980_v8 = vmax.f32 %v2939_v22, 0.0 }
 0x773   :  { %v2981_v24 = vmax.f32 %v2941_v36, 0.0 }
 0x774   :  { %v2982_v9 = vmax.f32 %v2943_v55, 0.0 }
 0x775   :  { %v2999_v12 = vpack.c.bf16 %v2981_v24, %v2979_v20 }
 0x776   :  { %v3000_v13 = vpack.c.bf16 %v2982_v9, %v2980_v8  ;;  %v2946_v14 = vpop.f32.mrb[156].mxu0 }
 0x777   :  { %v2947_v16 = vadd.f32 %v2946_v14, %v4596_v21  ;;  %v2948_v17 = vpop.f32.mrb[157].mxu0 }
 0x778   :  { %v2949_v18 = vadd.f32 %v2948_v17, %v4599_v23  ;;  %v2950_v62 = vpop.f32.mrb[158].mxu0  ;;  %3218 = vmatprep.mubr.bf16.mxu1 %v3000_v13 }
 0x779   :  { %v2951_v63 = vadd.f32 %v2950_v62, %v4596_v21  ;;  %v2952_v19 = vpop.f32.mrb[159].mxu0  ;;  %3219 = vmatmul.mubr.bf16.gmra.mrb[108].mxu1 %v2999_v12  ;;  %v2983_v26 = vmax.f32 %v2947_v16, 0.0 }
 0x77a   :  { %v2953_v25 = vadd.f32 %v2952_v19, %v4599_v23  ;;  %v2984_v28 = vmax.f32 %v2949_v18, 0.0 }
 0x77b   :  { %v2985_v27 = vmax.f32 %v2951_v63, 0.0 }
 0x77c   :  { %v2986_v30 = vmax.f32 %v2953_v25, 0.0 }
 0x77d   :  { %v3001_v10 = vpack.c.bf16 %v2985_v27, %v2983_v26 }
 0x77e   :  { %v3002_v31 = vpack.c.bf16 %v2986_v30, %v2984_v28 }
 0x780   :  { %3226 = vmatprep.mubr.bf16.mxu1 %v3002_v31 }
 0x781   :  { %3227 = vmatmul.mubr.bf16.gmra.mrb[112].mxu1 %v3001_v10 }
 0x81c   :  { %v3542_v50 = vpop.f32.mrb[160].mxu0 }
 0x81d   :  { %v3543_v0 = vpop.f32.mrb[161].mxu0 }
 0x81e   :  { %v3544_v21 = vadd.f32 %v3543_v0, %v3542_v50  ;;  %v3545_v11 = vpop.f32.mrb[162].mxu0 }
 0x81f   :  { %v3546_v38 = vpop.f32.mrb[163].mxu0 }
 0x820   :  { %v3173_v23 = vadd.f32 %v3544_v21, %v4636_v33  ;;  %v3547_v39 = vadd.f32 %v3546_v38, %v3545_v11 }
 0x822   :  { %3236 = vst.msk [vmem:[%s4726_s8] sm:$0xff] %vm3235_vm2, %v3173_v23  ;;  %v3176_v40 = vadd.f32 %v3547_v39, %v4636_v33 }
 0x824   :  { %3237 = vst.msk [vmem:[%s4726_s8 + $0x8] sm:$0xff] %vm3235_vm2, %v3176_v40  ;;  %v3548_v47 = vpop.f32.mrb[164].mxu0 }
 0x825   :  { %v3549_v48 = vpop.f32.mrb[165].mxu0 }
 0x826   :  { %v3550_v41 = vadd.f32 %v3549_v48, %v3548_v47  ;;  %v3551_v42 = vpop.f32.mrb[166].mxu0 }
 0x827   :  { %v3552_v44 = vpop.f32.mrb[167].mxu0 }
 0x828   :  { %v3181_v49 = vadd.f32 %v3550_v41, %v4636_v33  ;;  %v3553_v51 = vadd.f32 %v3552_v44, %v3551_v42 }
 0x82a   :  { %3238 = vst.msk [vmem:[%s4726_s8 + $0x10] sm:$0xff] %vm3235_vm2, %v3181_v49  ;;  %v3184_v52 = vadd.f32 %v3553_v51, %v4636_v33 }
 0x82c   :  { %3239 = vst.msk [vmem:[%s4726_s8 + $0x18] sm:$0xff] %vm3235_vm2, %v3184_v52  ;;  %v3554_v53 = vpop.f32.mrb[168].mxu0 }
 0x82d   :  { %v3555_v35 = vpop.f32.mrb[169].mxu0 }
 0x82e   :  { %v3556_v45 = vadd.f32 %v3555_v35, %v3554_v53  ;;  %v3557_v54 = vpop.f32.mrb[170].mxu0 }
 0x82f   :  { %v3558_v46 = vpop.f32.mrb[171].mxu0 }
 0x830   :  { %v3189_v56 = vadd.f32 %v3556_v45, %v4636_v33  ;;  %v3559_v37 = vadd.f32 %v3558_v46, %v3557_v54 }
 0x832   :  { %3240 = vst.msk [vmem:[%s4726_s8 + $0x20] sm:$0xff] %vm3235_vm2, %v3189_v56  ;;  %v3192_v57 = vadd.f32 %v3559_v37, %v4636_v33 }
 0x834   :  { %3241 = vst.msk [vmem:[%s4726_s8 + $0x28] sm:$0xff] %vm3235_vm2, %v3192_v57  ;;  %v3560_v32 = vpop.f32.mrb[96].mxu1 }
 0x835   :  { %v3561_v58 = vpop.f32.mrb[97].mxu1 }
 0x836   :  { %v3562_v59 = vadd.f32 %v3561_v58, %v3560_v32  ;;  %v3563_v34 = vpop.f32.mrb[98].mxu1 }
 0x837   :  { %v3564_v60 = vpop.f32.mrb[99].mxu1 }
 0x838   :  { %v3197_v61 = vadd.f32 %v3562_v59, %v4636_v33  ;;  %v3565_v1 = vadd.f32 %v3564_v60, %v3563_v34 }
 0x83a   :  { %3242 = vst.msk [vmem:[%s4726_s8 + $0x30] sm:$0xff] %vm3235_vm2, %v3197_v61  ;;  %v3200_v2 = vadd.f32 %v3565_v1, %v4636_v33 }
 0x83c   :  { %3243 = vst.msk [vmem:[%s4726_s8 + $0x38] sm:$0xff] %vm3235_vm2, %v3200_v2  ;;  %v3566_v3 = vpop.f32.mrb[100].mxu1 }
 0x83d   :  { %v3567_v4 = vpop.f32.mrb[101].mxu1 }
 0x83e   :  { %v3568_v5 = vadd.f32 %v3567_v4, %v3566_v3  ;;  %v3569_v6 = vpop.f32.mrb[102].mxu1 }
 0x83f   :  { %v3570_v7 = vpop.f32.mrb[103].mxu1 }
 0x840   :  { %v3205_v15 = vadd.f32 %v3568_v5, %v4636_v33  ;;  %v3571_v22 = vadd.f32 %v3570_v7, %v3569_v6 }
 0x842   :  { %3244 = vst.msk [vmem:[%s4726_s8 + $0x40] sm:$0xff] %vm3235_vm2, %v3205_v15  ;;  %v3208_v29 = vadd.f32 %v3571_v22, %v4636_v33 }
 0x844   :  { %3245 = vst.msk [vmem:[%s4726_s8 + $0x48] sm:$0xff] %vm3235_vm2, %v3208_v29  ;;  %v3572_v36 = vpop.f32.mrb[104].mxu1 }
 0x845   :  { %v3573_v43 = vpop.f32.mrb[105].mxu1 }
 0x846   :  { %v3574_v55 = vadd.f32 %v3573_v43, %v3572_v36  ;;  %v3575_v20 = vpop.f32.mrb[106].mxu1 }
 0x847   :  { %v3576_v24 = vpop.f32.mrb[107].mxu1 }
 0x848   :  { %v3213_v8 = vadd.f32 %v3574_v55, %v4636_v33  ;;  %v3577_v9 = vadd.f32 %v3576_v24, %v3575_v20 }
 0x84a   :  { %3246 = vst.msk [vmem:[%s4726_s8 + $0x50] sm:$0xff] %vm3235_vm2, %v3213_v8  ;;  %v3216_v12 = vadd.f32 %v3577_v9, %v4636_v33 }
 0x84c   :  { %3247 = vst.msk [vmem:[%s4726_s8 + $0x58] sm:$0xff] %vm3235_vm2, %v3216_v12  ;;  %v3578_v13 = vpop.f32.mrb[108].mxu1 }
 0x84d   :  { %v3579_v14 = vpop.f32.mrb[109].mxu1 }
 0x84e   :  { %v3580_v16 = vadd.f32 %v3579_v14, %v3578_v13  ;;  %v3581_v17 = vpop.f32.mrb[110].mxu1 }
 0x84f   :  { %v3582_v18 = vpop.f32.mrb[111].mxu1 }
 0x850   :  { %v3221_v62 = vadd.f32 %v3580_v16, %v4636_v33  ;;  %v3583_v63 = vadd.f32 %v3582_v18, %v3581_v17 }
 0x852   :  { %3248 = vst.msk [vmem:[%s4726_s8 + $0x60] sm:$0xff] %vm3235_vm2, %v3221_v62  ;;  %v3224_v19 = vadd.f32 %v3583_v63, %v4636_v33 }
 0x854   :  { %3249 = vst.msk [vmem:[%s4726_s8 + $0x68] sm:$0xff] %vm3235_vm2, %v3224_v19  ;;  %v3584_v25 = vpop.f32.mrb[112].mxu1 }
 0x855   :  { %v3585_v26 = vpop.f32.mrb[113].mxu1 }
 0x856   :  { %v3586_v27 = vadd.f32 %v3585_v26, %v3584_v25  ;;  %v3587_v28 = vpop.f32.mrb[114].mxu1 }
 0x857   :  { %v3588_v30 = vpop.f32.mrb[115].mxu1 }
 0x858   :  { %v3229_v10 = vadd.f32 %v3586_v27, %v4636_v33  ;;  %v3589_v31 = vadd.f32 %v3588_v30, %v3587_v28 }
 0x85a   :  { %3250 = vst.msk [vmem:[%s4726_s8 + $0x70] sm:$0xff] %vm3235_vm2, %v3229_v10  ;;  %v3232_v50 = vadd.f32 %v3589_v31, %v4636_v33 }
 0x85c   :  { %3251 = vst.msk [vmem:[%s4726_s8 + $0x78] sm:$0xff] %vm3235_vm2, %v3232_v50 }
 0x85d   :  { %3256 = vsyncpa [#allocation3], 1 }

</bundles_post_ra>
